<compile_context>
chip_gen: v5e
topology: v5e:2x2
jax: 0.10.0
libtpu: 0.0.40
codegen_flags: <defaults>
</compile_context>

<pallas_src>
import functools

import jax
import jax.numpy as jnp
import numpy as np
from jax import lax
from jax.experimental import pallas as pl
from jax.experimental.pallas import tpu as pltpu


def _round_up(x, m):
    return (x + m - 1) // m * m


def _tpu_generation():
    try:
        kind = jax.devices()[0].device_kind.lower()
    except Exception:
        return None
    for gen in ("v7", "v6", "v5"):
        if gen in kind:
            return gen
    return None


def _choose_tiles(Lq, Lk, U, itemsize, gen, max_query_tile, max_key_tile):
    """Pick (TQ, TK) so the (U, TQ, TK) tanh intermediate fits the per-generation
    VMEM budget (v7x has only 64 MiB per TensorCore)."""
    SUB = 8
    budget = (6 if gen == "v7" else 12) * 1024 * 1024  # bytes for tanh temporaries
    # Prefer a ~256-wide key tile; shrink the query tile first if U is large.
    tq_cap = max(SUB, budget // (3 * U * 256 * itemsize) // SUB * SUB)
    TQ = min(max_query_tile, tq_cap)
    if TQ >= Lq:
        TQ = Lq                      # untiled queries (full-dim block is legal)
    else:
        TQ = max(SUB, TQ // SUB * SUB)
    tk_cap = max(SUB, budget // (3 * U * max(TQ, 1) * itemsize) // SUB * SUB)
    TK = min(max_key_tile, tk_cap)
    if TK >= Lk:
        TK = Lk                      # untiled keys
    else:
        TK = max(SUB, TK // SUB * SUB)
    return TQ, TK


def _mlp_attention_kernel(vl_ref, nkt_ref,                 # SMEM scalar prefetch (B,)
                          q_ref, k_ref, v_ref,             # VMEM (TQ,Dq),(TK,Dk),(TK,Dv_p)
                          wq_ref, wk_ref, wv_ref,          # VMEM (U,Dq),(U,Dk),(U,1)
                          o_ref,                           # VMEM (TQ,Dv_p)
                          qp_sc, m_sc, l_sc, acc_sc,       # VMEM scratch
                          *, lk_real, compute_dtype):
    b = pl.program_id(0)
    kv = pl.program_id(2)
    U, TQ = qp_sc.shape
    TK = k_ref.shape[0]

    @pl.when(kv == 0)
    def _init():
        # Query projection once per (batch row, query tile): (U,Dq) x (TQ,Dq) -> (U,TQ).
        qp_sc[...] = jnp.einsum("ud,qd->uq", wq_ref[...], q_ref[...],
                                preferred_element_type=jnp.float32)
        # -1e30 (not -inf) so no inf-inf can ever appear in alpha/p.
        m_sc[...] = jnp.full(m_sc.shape, -1e30, dtype=jnp.float32)
        l_sc[...] = jnp.zeros(l_sc.shape, dtype=jnp.float32)
        acc_sc[...] = jnp.zeros(acc_sc.shape, dtype=jnp.float32)

    # Skip key tiles that lie entirely beyond this row's last needed key
    # (exact: such tiles would only contribute exp(-1e6 - m) == 0 terms).
    @pl.when(kv < nkt_ref[b])
    def _compute():
        # Key projection for this tile: (U,Dk) x (TK,Dk) -> (U,TK).
        kp = jnp.einsum("ud,kd->uk", wk_ref[...], k_ref[...],
                        preferred_element_type=jnp.float32)

        # Additive-attention features laid out (U, TQ, TK): TK on lanes, TQ on
        # sublanes, the true (unpadded) U on the leading axis -> the binding
        # EUP tanh work is exactly U per score element, no padding lanes.
        qp3 = qp_sc[...][:, :, None].astype(compute_dtype)        # (U, TQ, 1)
        kp3 = kp[:, None, :].astype(compute_dtype)                # (U, 1, TK)
        feats = jnp.tanh(qp3 + kp3)                               # (U, TQ, TK)
        wv3 = wv_ref[...].reshape(U, 1, 1).astype(compute_dtype)
        # scores land directly in (TQ, TK) lane layout; f32 accumulation.
        scores = jnp.sum(feats * wv3, axis=0, dtype=jnp.float32)  # (TQ, TK)

        # Masking: j >= valid_len -> -1e6 (reference semantics);
        #          j >= real Lk (pure padding) -> -1e30 so pads never contribute.
        col = kv * TK + lax.broadcasted_iota(jnp.int32, scores.shape, 1)
        vl = vl_ref[b]
        scores = jnp.where(col < vl, scores,
                           jnp.where(col < lk_real,
                                     jnp.float32(-1e6), jnp.float32(-1e30)))

        # Flash-style online softmax across key tiles (all stats in f32).
        m_prev = m_sc[...]
        m_new = jnp.maximum(m_prev, jnp.max(scores, axis=-1, keepdims=True))
        alpha = jnp.exp(m_prev - m_new)
        p = jnp.exp(scores - m_new)                               # (TQ, TK)
        l_sc[...] = alpha * l_sc[...] + jnp.sum(p, axis=-1, keepdims=True)
        acc_sc[...] = alpha * acc_sc[...] + jnp.dot(
            p.astype(v_ref.dtype), v_ref[...], preferred_element_type=jnp.float32)
        m_sc[...] = m_new

    @pl.when(kv == pl.num_programs(2) - 1)
    def _finalize():
        # Dropout is eval-mode identity; normalize and store (lane-dense Dv).
        r = pl.reciprocal(l_sc[...], approx=True)
        r = r * (2.0 - l_sc[...] * r)          # one Newton step -> ~f32-exact
        o_ref[...] = (acc_sc[...] * r).astype(o_ref.dtype)


def mlp_attention(query, key, value, valid_len, wq, wk, wv, *,
                  compute_dtype=None, max_query_tile=256, max_key_tile=512):
    """Additive (MLP) attention; weights follow the PyTorch nn.Linear layout."""
    B, Lq, Dq = query.shape
    _, Lk, Dk = key.shape
    Dv = value.shape[-1]
    U = wq.shape[0]
    out_dtype = value.dtype

    gen = _tpu_generation()
    if compute_dtype is None:
        # bf16 VPU/EUP paths exist on v6e/v7x (~2x on the binding tanh);
        # v5e has no bf16 VPU/EUP -> keep f32 there.
        compute_dtype = jnp.bfloat16 if gen in ("v6", "v7") else jnp.float32
    itemsize = jnp.dtype(compute_dtype).itemsize

    TQ, TK = _choose_tiles(Lq, Lk, U, itemsize, gen, max_query_tile, max_key_tile)
    Lq_p = _round_up(Lq, TQ)
    Lk_p = _round_up(Lk, TK)
    Dv_p = _round_up(Dv, 128)
    nQ, nK = Lq_p // TQ, Lk_p // TK

    # Only pad what the tiling actually requires (ragged seq dims + lane-dense
    # output feature dim).  Dq/Dk stay at their true sizes (full-dim blocks are
    # legal) and inputs keep their original dtype -> no extra HBM pad/cast copies.
    q_p = query if Lq_p == Lq else jnp.pad(query, ((0, 0), (0, Lq_p - Lq), (0, 0)))
    k_p = key if Lk_p == Lk else jnp.pad(key, ((0, 0), (0, Lk_p - Lk), (0, 0)))
    v_p = value
    if Lk_p != Lk or Dv_p != Dv:
        v_p = jnp.pad(value, ((0, 0), (0, Lk_p - Lk), (0, Dv_p - Dv)))
    wv_col = wv.reshape(U, 1)                      # (1,U) torch layout -> (U,1)

    # Scalar-prefetch operands (SMEM): per-row valid_len and number of key tiles
    # that actually need processing.  valid_len == 0 matches the -1e6 reference
    # semantics (uniform over all real keys), so it keeps every real tile.
    vl = valid_len.astype(jnp.int32).reshape(B)
    eff = jnp.where(vl > 0, vl, jnp.int32(Lk))
    nkt = jnp.clip((eff + TK - 1) // TK, 1, nK).astype(jnp.int32)

    kernel = functools.partial(_mlp_attention_kernel,
                               lk_real=Lk, compute_dtype=compute_dtype)

    # Generation-aware scoped-VMEM cap (v7x: 64 MiB per TC; v5e/v6e: 128 MiB).
    vmem_limit = (40 if gen == "v7" else 80) * 1024 * 1024

    out = pl.pallas_call(
        kernel,
        out_shape=jax.ShapeDtypeStruct((B, Lq_p, Dv_p), out_dtype),
        grid_spec=pltpu.PrefetchScalarGridSpec(
            num_scalar_prefetch=2,
            grid=(B, nQ, nK),
            in_specs=[
                pl.BlockSpec((None, TQ, Dq), lambda b, q, k, vl, nkt: (b, q, 0)),
                # K/V index clamped with the prefetched tile count so skipped
                # (fully masked) key tiles are not re-DMA'd.
                pl.BlockSpec((None, TK, Dk),
                             lambda b, q, k, vl, nkt: (b, jnp.minimum(k, nkt[b] - 1), 0)),
                pl.BlockSpec((None, TK, Dv_p),
                             lambda b, q, k, vl, nkt: (b, jnp.minimum(k, nkt[b] - 1), 0)),
                pl.BlockSpec((U, Dq), lambda b, q, k, vl, nkt: (0, 0)),   # w_q
                pl.BlockSpec((U, Dk), lambda b, q, k, vl, nkt: (0, 0)),   # w_k
                pl.BlockSpec((U, 1), lambda b, q, k, vl, nkt: (0, 0)),    # w_v (column)
            ],
            out_specs=pl.BlockSpec((None, TQ, Dv_p), lambda b, q, k, vl, nkt: (b, q, 0)),
            scratch_shapes=[
                pltpu.VMEM((U, TQ), jnp.float32),     # cached query projection
                pltpu.VMEM((TQ, 1), jnp.float32),     # running max
                pltpu.VMEM((TQ, 1), jnp.float32),     # running sum
                pltpu.VMEM((TQ, Dv_p), jnp.float32),  # output accumulator
            ],
        ),
        compiler_params=pltpu.CompilerParams(
            # batch and query-tile axes are independent (megacore / v7x 2-TC);
            # the key axis carries the online-softmax state and stays sequential.
            dimension_semantics=("parallel", "parallel", "arbitrary"),
            vmem_limit_bytes=vmem_limit),
    )(vl, nkt, q_p, k_p, v_p, wq, wk, wv_col)

    return out[:, :Lq, :Dv]


def mlp_attention_ref(query, key, value, valid_len, wq, wk, wv):
    qp = jnp.einsum("bqd,ud->bqu", query, wq)
    kp = jnp.einsum("bkd,ud->bku", key, wk)
    feats = jnp.tanh(qp[:, :, None, :] + kp[:, None, :, :])
    scores = jnp.einsum("bqku,u->bqk", feats, wv[0])
    col = jnp.arange(scores.shape[-1])[None, None, :]
    masked = jnp.where(col < valid_len[:, None, None], scores, -1e6)
    attn = jax.nn.softmax(masked, axis=-1)
    return jnp.einsum("bqk,bkv->bqv", attn, value)


if __name__ == "__main__":
    B, Lq, Lk = 2, 8, 160
    Dq, Dk, Dv, U = 20, 16, 24, 32

    root = jax.random.PRNGKey(0)
    ks = jax.random.split(root, 6)
    query = jax.random.normal(ks[0], (B, Lq, Dq), jnp.float32)
    key = jax.random.normal(ks[1], (B, Lk, Dk), jnp.float32)
    value = jax.random.normal(ks[2], (B, Lk, Dv), jnp.float32)
    valid_len = jnp.array([3, 150], dtype=jnp.int32)

    # Deterministic "Linear" weights (PyTorch layout: (out_features, in_features))
    wq = 0.1 * jax.random.normal(ks[3], (U, Dq), jnp.float32)
    wk = 0.1 * jax.random.normal(ks[4], (U, Dk), jnp.float32)
    wv = 0.1 * jax.random.normal(ks[5], (1, U), jnp.float32)

    ref = mlp_attention_ref(query, key, value, valid_len, wq, wk, wv)

    # 1) f32 compute path, single key tile (strict numerical check).
    out = mlp_attention(query, key, value, valid_len, wq, wk, wv,
                        compute_dtype=jnp.float32)
    out = jax.block_until_ready(out)
    np.testing.assert_allclose(np.asarray(out), np.asarray(ref), rtol=1e-4, atol=1e-4)

    # 2) generation-default compute dtype (bf16 on v6e/v7x, f32 on v5e) with
    #    forced key tiling so the online softmax + masked-tile-skip path runs.
    out2 = mlp_attention(query, key, value, valid_len, wq, wk, wv,
                         max_key_tile=128)
    out2 = jax.block_until_ready(out2)
    np.testing.assert_allclose(np.asarray(out2), np.asarray(ref), rtol=3e-2, atol=3e-2)

    print("KERNEL_OK")
</pallas_src>

<mosaic_0001>
module attributes {stable_mosaic.version = 11 : i64} {
  func.func @_mlp_attention_kernel(%arg0: i32, %arg1: i32, %arg2: i32, %arg3: memref<2xi32, #tpu.memory_space<smem>>, %arg4: memref<2xi32, #tpu.memory_space<smem>>, %arg5: memref<1x8x20xf32, #tpu.memory_space<vmem>>, %arg6: memref<1x160x16xf32, #tpu.memory_space<vmem>>, %arg7: memref<1x160x128xf32, #tpu.memory_space<vmem>>, %arg8: memref<32x20xf32, #tpu.memory_space<vmem>>, %arg9: memref<32x16xf32, #tpu.memory_space<vmem>>, %arg10: memref<32x1xf32, #tpu.memory_space<vmem>>, %arg11: memref<1x8x128xf32, #tpu.memory_space<vmem>>, %arg12: memref<32x8xf32, #tpu.memory_space<vmem>>, %arg13: memref<8x1xf32, #tpu.memory_space<vmem>>, %arg14: memref<8x1xf32, #tpu.memory_space<vmem>>, %arg15: memref<8x128xf32, #tpu.memory_space<vmem>>) attributes {dimension_semantics = [#tpu.dimension_semantics<parallel>, #tpu.dimension_semantics<parallel>, #tpu.dimension_semantics<arbitrary>], iteration_bounds = array<i64: 2, 1, 1>, scalar_prefetch = 2 : i64, scratch_operands = 4 : i64, tpu.core_type = #tpu.core_type<tc>, window_params = [{transform_indices = @transform_0, window_bounds = array<i64: 1, 8, 20>}, {transform_indices = @transform_1, window_bounds = array<i64: 1, 160, 16>}, {transform_indices = @transform_2, window_bounds = array<i64: 1, 160, 128>}, {pipeline_mode = #tpu.pipeline_mode<synchronous>, transform_indices = @transform_3, window_bounds = array<i64: 32, 20>}, {pipeline_mode = #tpu.pipeline_mode<synchronous>, transform_indices = @transform_4, window_bounds = array<i64: 32, 16>}, {pipeline_mode = #tpu.pipeline_mode<synchronous>, transform_indices = @transform_5, window_bounds = array<i64: 32, 1>}, {transform_indices = @transform_6, window_bounds = array<i64: 1, 8, 128>}]} {
    %c0_i32 = arith.constant 0 : i32
    %0 = arith.cmpi eq, %arg2, %c0_i32 : i32
    %1 = arith.extui %0 : i1 to i32
    %c0_i32_0 = arith.constant 0 : i32
    %2 = arith.cmpi ne, %1, %c0_i32_0 : i32
    scf.if %2 {
      %c0 = arith.constant 0 : index
      %c0_4 = arith.constant 0 : index
      %11 = vector.load %arg8[%c0, %c0_4] : memref<32x20xf32, #tpu.memory_space<vmem>>, vector<32x20xf32>
      %c0_5 = arith.constant 0 : index
      %c0_6 = arith.constant 0 : index
      %c0_7 = arith.constant 0 : index
      %12 = vector.load %arg5[%c0_5, %c0_6, %c0_7] : memref<1x8x20xf32, #tpu.memory_space<vmem>>, vector<1x8x20xf32>
      %13 = vector.shape_cast %12 : vector<1x8x20xf32> to vector<8x20xf32>
      "tpu.trace_start"() <{level = 10 : i32, message = "ud,qd->uq"}> : () -> ()
      %cst = arith.constant dense<0.000000e+00> : vector<32x8xf32>
      %14 = tpu.matmul %11, %13, %cst {dimension_numbers = #tpu.dot_dimension_numbers<[1], [1], [0], [0], [0, 0, 1, 0], [], []>} : vector<32x20xf32>, vector<8x20xf32>, vector<32x8xf32> -> vector<32x8xf32>
      "tpu.trace_stop"() : () -> ()
      %c0_8 = arith.constant 0 : index
      %c0_9 = arith.constant 0 : index
      %15 = vector.load %arg12[%c0_8, %c0_9] : memref<32x8xf32, #tpu.memory_space<vmem>>, vector<32x8xf32>
      tpu.vector_store %arg12[%c0_8, %c0_9], %14 {strides = array<i32>} : memref<32x8xf32, #tpu.memory_space<vmem>>, vector<32x8xf32>,
      %cst_10 = arith.constant -1.000000e+30 : f32
      %16 = vector.broadcast %cst_10 : f32 to vector<8x1xf32>
      %c0_11 = arith.constant 0 : index
      %c0_12 = arith.constant 0 : index
      %17 = vector.load %arg13[%c0_11, %c0_12] : memref<8x1xf32, #tpu.memory_space<vmem>>, vector<8x1xf32>
      tpu.vector_store %arg13[%c0_11, %c0_12], %16 {strides = array<i32>} : memref<8x1xf32, #tpu.memory_space<vmem>>, vector<8x1xf32>,
      %cst_13 = arith.constant 0.000000e+00 : f32
      %18 = vector.broadcast %cst_13 : f32 to vector<8x1xf32>
      %c0_14 = arith.constant 0 : index
      %c0_15 = arith.constant 0 : index
      %19 = vector.load %arg14[%c0_14, %c0_15] : memref<8x1xf32, #tpu.memory_space<vmem>>, vector<8x1xf32>
      tpu.vector_store %arg14[%c0_14, %c0_15], %18 {strides = array<i32>} : memref<8x1xf32, #tpu.memory_space<vmem>>, vector<8x1xf32>,
      %cst_16 = arith.constant 0.000000e+00 : f32
      %20 = vector.broadcast %cst_16 : f32 to vector<8x128xf32>
      %c0_17 = arith.constant 0 : index
      %c0_18 = arith.constant 0 : index
      %21 = vector.load %arg15[%c0_17, %c0_18] : memref<8x128xf32, #tpu.memory_space<vmem>>, vector<8x128xf32>
      tpu.vector_store %arg15[%c0_17, %c0_18], %20 {strides = array<i32>} : memref<8x128xf32, #tpu.memory_space<vmem>>, vector<8x128xf32>,
    } else {
    }
    %3 = arith.index_cast %arg0 : i32 to index
    %4 = memref.load %arg4[%3] : memref<2xi32, #tpu.memory_space<smem>>
    %5 = arith.cmpi slt, %arg2, %4 : i32
    %6 = arith.extui %5 : i1 to i32
    %c0_i32_1 = arith.constant 0 : i32
    %7 = arith.cmpi ne, %6, %c0_i32_1 : i32
    scf.if %7 {
      %c0 = arith.constant 0 : index
      %c0_4 = arith.constant 0 : index
      %11 = vector.load %arg9[%c0, %c0_4] : memref<32x16xf32, #tpu.memory_space<vmem>>, vector<32x16xf32>
      %c0_5 = arith.constant 0 : index
      %c0_6 = arith.constant 0 : index
      %c0_7 = arith.constant 0 : index
      %12 = vector.load %arg6[%c0_5, %c0_6, %c0_7] : memref<1x160x16xf32, #tpu.memory_space<vmem>>, vector<1x160x16xf32>
      %13 = vector.shape_cast %12 : vector<1x160x16xf32> to vector<160x16xf32>
      "tpu.trace_start"() <{level = 10 : i32, message = "ud,kd->uk"}> : () -> ()
      %cst = arith.constant dense<0.000000e+00> : vector<32x160xf32>
      %14 = tpu.matmul %11, %13, %cst {dimension_numbers = #tpu.dot_dimension_numbers<[1], [1], [0], [0], [0, 0, 1, 0], [], []>} : vector<32x16xf32>, vector<160x16xf32>, vector<32x160xf32> -> vector<32x160xf32>
      "tpu.trace_stop"() : () -> ()
      %c0_8 = arith.constant 0 : index
      %c0_9 = arith.constant 0 : index
      %15 = vector.load %arg12[%c0_8, %c0_9] : memref<32x8xf32, #tpu.memory_space<vmem>>, vector<32x8xf32>
      %16 = vector.shape_cast %15 : vector<32x8xf32> to vector<32x8x1xf32>
      %17 = vector.shape_cast %14 : vector<32x160xf32> to vector<32x1x160xf32>
      %18 = vector.broadcast %16 : vector<32x8x1xf32> to vector<32x8x160xf32>
      %19 = vector.broadcast %17 : vector<32x1x160xf32> to vector<32x8x160xf32>
      %20 = arith.addf %18, %19 : vector<32x8x160xf32>
      %21 = math.tanh %20 : vector<32x8x160xf32>
      %c0_10 = arith.constant 0 : index
      %c0_11 = arith.constant 0 : index
      %22 = vector.load %arg10[%c0_10, %c0_11] : memref<32x1xf32, #tpu.memory_space<vmem>>, vector<32x1xf32>
      %23 = vector.shape_cast %22 : vector<32x1xf32> to vector<32x1x1xf32>
      %24 = vector.broadcast %23 : vector<32x1x1xf32> to vector<32x8x160xf32>
      %25 = arith.mulf %21, %24 : vector<32x8x160xf32>
      %cst_12 = arith.constant dense<0.000000e+00> : vector<8x160xf32>
      %26 = vector.multi_reduction <add>, %25, %cst_12 [0] : vector<32x8x160xf32> to vector<8x160xf32>
      %c160_i32 = arith.constant 160 : i32
      %27 = arith.muli %arg2, %c160_i32 : i32
      %28 = tpu.iota {dimensions = array<i32: 1>} : vector<8x160xi32>
      %29 = vector.broadcast %27 : i32 to vector<8x160xi32>
      %30 = arith.addi %29, %28 : vector<8x160xi32>
      %31 = arith.index_cast %arg0 : i32 to index
      %32 = memref.load %arg3[%31] : memref<2xi32, #tpu.memory_space<smem>>
      %33 = vector.broadcast %32 : i32 to vector<8x160xi32>
      %34 = arith.cmpi slt, %30, %33 : vector<8x160xi32>
      %c160_i32_13 = arith.constant 160 : i32
      %35 = vector.broadcast %c160_i32_13 : i32 to vector<8x160xi32>
      %36 = arith.cmpi slt, %30, %35 : vector<8x160xi32>
      %cst_14 = arith.constant -1.000000e+06 : f32
      %cst_15 = arith.constant -1.000000e+30 : f32
      %37 = vector.broadcast %cst_14 : f32 to vector<8x160xf32>
      %38 = vector.broadcast %cst_15 : f32 to vector<8x160xf32>
      %39 = arith.select %36, %37, %38 : vector<8x160xi1>, vector<8x160xf32>
      %40 = arith.select %34, %26, %39 : vector<8x160xi1>, vector<8x160xf32>
      %c0_16 = arith.constant 0 : index
      %c0_17 = arith.constant 0 : index
      %41 = vector.load %arg13[%c0_16, %c0_17] : memref<8x1xf32, #tpu.memory_space<vmem>>, vector<8x1xf32>
      %cst_18 = arith.constant dense<0xFF800000> : vector<8xf32>
      %42 = vector.multi_reduction <maximumf>, %40, %cst_18 [1] : vector<8x160xf32> to vector<8xf32>
      %43 = vector.shape_cast %42 : vector<8xf32> to vector<8x1xf32>
      %44 = arith.maximumf %41, %43 : vector<8x1xf32>
      %45 = arith.subf %41, %44 : vector<8x1xf32>
      %46 = math.exp %45 : vector<8x1xf32>
      %47 = vector.broadcast %44 : vector<8x1xf32> to vector<8x160xf32>
      %48 = arith.subf %40, %47 : vector<8x160xf32>
      %49 = math.exp %48 : vector<8x160xf32>
      %c0_19 = arith.constant 0 : index
      %c0_20 = arith.constant 0 : index
      %50 = vector.load %arg14[%c0_19, %c0_20] : memref<8x1xf32, #tpu.memory_space<vmem>>, vector<8x1xf32>
      %51 = arith.mulf %46, %50 : vector<8x1xf32>
      %cst_21 = arith.constant dense<0.000000e+00> : vector<8xf32>
      %52 = vector.multi_reduction <add>, %49, %cst_21 [1] : vector<8x160xf32> to vector<8xf32>
      %53 = vector.shape_cast %52 : vector<8xf32> to vector<8x1xf32>
      %54 = arith.addf %51, %53 : vector<8x1xf32>
      %c0_22 = arith.constant 0 : index
      %c0_23 = arith.constant 0 : index
      %55 = vector.load %arg14[%c0_22, %c0_23] : memref<8x1xf32, #tpu.memory_space<vmem>>, vector<8x1xf32>
      tpu.vector_store %arg14[%c0_22, %c0_23], %54 {strides = array<i32>} : memref<8x1xf32, #tpu.memory_space<vmem>>, vector<8x1xf32>,
      %c0_24 = arith.constant 0 : index
      %c0_25 = arith.constant 0 : index
      %56 = vector.load %arg15[%c0_24, %c0_25] : memref<8x128xf32, #tpu.memory_space<vmem>>, vector<8x128xf32>
      %57 = vector.broadcast %46 : vector<8x1xf32> to vector<8x128xf32>
      %58 = arith.mulf %57, %56 : vector<8x128xf32>
      %c0_26 = arith.constant 0 : index
      %c0_27 = arith.constant 0 : index
      %c0_28 = arith.constant 0 : index
      %59 = vector.load %arg7[%c0_26, %c0_27, %c0_28] : memref<1x160x128xf32, #tpu.memory_space<vmem>>, vector<1x160x128xf32>
      %60 = vector.shape_cast %59 : vector<1x160x128xf32> to vector<160x128xf32>
      %cst_29 = arith.constant dense<0.000000e+00> : vector<8x128xf32>
      %61 = tpu.matmul %49, %60, %cst_29 {dimension_numbers = #tpu.dot_dimension_numbers<[1], [0], [0], [1], [0, 0, 1, 1], [], []>} : vector<8x160xf32>, vector<160x128xf32>, vector<8x128xf32> -> vector<8x128xf32>
      %62 = arith.addf %58, %61 : vector<8x128xf32>
      %c0_30 = arith.constant 0 : index
      %c0_31 = arith.constant 0 : index
      %63 = vector.load %arg15[%c0_30, %c0_31] : memref<8x128xf32, #tpu.memory_space<vmem>>, vector<8x128xf32>
      tpu.vector_store %arg15[%c0_30, %c0_31], %62 {strides = array<i32>} : memref<8x128xf32, #tpu.memory_space<vmem>>, vector<8x128xf32>,
      %c0_32 = arith.constant 0 : index
      %c0_33 = arith.constant 0 : index
      %64 = vector.load %arg13[%c0_32, %c0_33] : memref<8x1xf32, #tpu.memory_space<vmem>>, vector<8x1xf32>
      tpu.vector_store %arg13[%c0_32, %c0_33], %44 {strides = array<i32>} : memref<8x1xf32, #tpu.memory_space<vmem>>, vector<8x1xf32>,
    } else {
    }
    %c0_i32_2 = arith.constant 0 : i32
    %8 = arith.cmpi eq, %arg2, %c0_i32_2 : i32
    %9 = arith.extui %8 : i1 to i32
    %c0_i32_3 = arith.constant 0 : i32
    %10 = arith.cmpi ne, %9, %c0_i32_3 : i32
    scf.if %10 {
      %c0 = arith.constant 0 : index
      %c0_4 = arith.constant 0 : index
      %11 = vector.load %arg14[%c0, %c0_4] : memref<8x1xf32, #tpu.memory_space<vmem>>, vector<8x1xf32>
      %12 = tpu.reciprocal %11 {approx = true} : vector<8x1xf32> -> vector<8x1xf32>
      %c0_5 = arith.constant 0 : index
      %c0_6 = arith.constant 0 : index
      %13 = vector.load %arg14[%c0_5, %c0_6] : memref<8x1xf32, #tpu.memory_space<vmem>>, vector<8x1xf32>
      %14 = arith.mulf %13, %12 : vector<8x1xf32>
      %cst = arith.constant 2.000000e+00 : f32
      %15 = vector.broadcast %cst : f32 to vector<8x1xf32>
      %16 = arith.subf %15, %14 : vector<8x1xf32>
      %17 = arith.mulf %12, %16 : vector<8x1xf32>
      %c0_7 = arith.constant 0 : index
      %c0_8 = arith.constant 0 : index
      %18 = vector.load %arg15[%c0_7, %c0_8] : memref<8x128xf32, #tpu.memory_space<vmem>>, vector<8x128xf32>
      %19 = vector.broadcast %17 : vector<8x1xf32> to vector<8x128xf32>
      %20 = arith.mulf %18, %19 : vector<8x128xf32>
      %c0_9 = arith.constant 0 : index
      %c0_10 = arith.constant 0 : index
      %c0_11 = arith.constant 0 : index
      %21 = vector.load %arg11[%c0_9, %c0_10, %c0_11] : memref<1x8x128xf32, #tpu.memory_space<vmem>>, vector<1x8x128xf32>
      %22 = vector.shape_cast %21 : vector<1x8x128xf32> to vector<8x128xf32>
      %23 = vector.shape_cast %20 : vector<8x128xf32> to vector<1x8x128xf32>
      tpu.vector_store %arg11[%c0_9, %c0_10, %c0_11], %23 {strides = array<i32>} : memref<1x8x128xf32, #tpu.memory_space<vmem>>, vector<1x8x128xf32>,
    } else {
    }
    return
  }
  func.func @transform_0(%arg0: i32, %arg1: i32, %arg2: i32, %arg3: memref<2xi32, #tpu.memory_space<smem>>, %arg4: memref<2xi32, #tpu.memory_space<smem>>) -> (i32, i32, i32) {
    %c0_i32 = arith.constant 0 : i32
    %c0_i32_0 = arith.constant 0 : i32
    return %arg0, %arg1, %c0_i32 : i32, i32, i32
  }
  func.func @transform_1(%arg0: i32, %arg1: i32, %arg2: i32, %arg3: memref<2xi32, #tpu.memory_space<smem>>, %arg4: memref<2xi32, #tpu.memory_space<smem>>) -> (i32, i32, i32) {
    %0 = arith.index_cast %arg0 : i32 to index
    %1 = memref.load %arg4[%0] : memref<2xi32, #tpu.memory_space<smem>>
    %c1_i32 = arith.constant 1 : i32
    %2 = arith.subi %1, %c1_i32 : i32
    %3 = arith.minsi %arg2, %2 : i32
    %c0_i32 = arith.constant 0 : i32
    %c0_i32_0 = arith.constant 0 : i32
    return %arg0, %3, %c0_i32 : i32, i32, i32
  }
  func.func @transform_2(%arg0: i32, %arg1: i32, %arg2: i32, %arg3: memref<2xi32, #tpu.memory_space<smem>>, %arg4: memref<2xi32, #tpu.memory_space<smem>>) -> (i32, i32, i32) {
    %0 = arith.index_cast %arg0 : i32 to index
    %1 = memref.load %arg4[%0] : memref<2xi32, #tpu.memory_space<smem>>
    %c1_i32 = arith.constant 1 : i32
    %2 = arith.subi %1, %c1_i32 : i32
    %3 = arith.minsi %arg2, %2 : i32
    %c0_i32 = arith.constant 0 : i32
    %c0_i32_0 = arith.constant 0 : i32
    return %arg0, %3, %c0_i32 : i32, i32, i32
  }
  func.func @transform_3(%arg0: i32, %arg1: i32, %arg2: i32, %arg3: memref<2xi32, #tpu.memory_space<smem>>, %arg4: memref<2xi32, #tpu.memory_space<smem>>) -> (i32, i32) {
    %c0_i32 = arith.constant 0 : i32
    %c0_i32_0 = arith.constant 0 : i32
    %c0_i32_1 = arith.constant 0 : i32
    return %c0_i32, %c0_i32_0 : i32, i32
  }
  func.func @transform_4(%arg0: i32, %arg1: i32, %arg2: i32, %arg3: memref<2xi32, #tpu.memory_space<smem>>, %arg4: memref<2xi32, #tpu.memory_space<smem>>) -> (i32, i32) {
    %c0_i32 = arith.constant 0 : i32
    %c0_i32_0 = arith.constant 0 : i32
    %c0_i32_1 = arith.constant 0 : i32
    return %c0_i32, %c0_i32_0 : i32, i32
  }
  func.func @transform_5(%arg0: i32, %arg1: i32, %arg2: i32, %arg3: memref<2xi32, #tpu.memory_space<smem>>, %arg4: memref<2xi32, #tpu.memory_space<smem>>) -> (i32, i32) {
    %c0_i32 = arith.constant 0 : i32
    %c0_i32_0 = arith.constant 0 : i32
    %c0_i32_1 = arith.constant 0 : i32
    return %c0_i32, %c0_i32_0 : i32, i32
  }
  func.func @transform_6(%arg0: i32, %arg1: i32, %arg2: i32, %arg3: memref<2xi32, #tpu.memory_space<smem>>, %arg4: memref<2xi32, #tpu.memory_space<smem>>) -> (i32, i32, i32) {
    %c0_i32 = arith.constant 0 : i32
    %c0_i32_0 = arith.constant 0 : i32
    return %arg0, %arg1, %c0_i32 : i32, i32, i32
  }
}

</mosaic_0001>

<bundles_post_ra>
// kernel: tpu_custom_call.1
= control target key start
LH: loop header
LB: loop body
LE: loop exit
PB: predicated region body
PF: predicated region fallthrough
CT: control target
= control target key end

     0   :  { %s2215_s11 = smov [#allocation7]   ;;  %s2216_s12 = smov [#allocation8]   ;;  %s2923_s0 = inlined_call_operand.vmem [shape: s32[2], index: 0, kind: input, shape index: {}]   ;;  %s2924_s2 = inlined_call_operand.vmem [shape: f32[2,8,20], index: 2, kind: input, shape index: {}]   ;;  %s2925_s3 = inlined_call_operand.vmem [shape: f32[2,160,16], index: 3, kind: input, shape index: {}]   ;;  %s2926_s4 = inlined_call_operand.vmem [shape: f32[2,160,128], index: 4, kind: input, shape index: {}]   ;;  %s2927_s5 = inlined_call_operand.vmem [shape: f32[32,20], index: 5, kind: input, shape index: {}]   ;;  %s2928_s6 = inlined_call_operand.vmem [shape: f32[32,16], index: 6, kind: input, shape index: {}]   ;;  %s2929_s7 = inlined_call_operand.vmem [shape: f32[32,1], index: 7, kind: input, shape index: {}]   ;;  %s2930_s8 = inlined_call_operand.hbm [shape: f32[2,8,128], index: 8, kind: output, shape index: {}]   ;;  %s2931_s1 = inlined_call_operand.vmem [shape: s32[2], index: 1, kind: input, shape index: {}]  }
   0x1   :  { %2934 = sst [smem:[#allocation14_spill]] %s2924_s2  ;;  %s14_s29 = sshll.u32 %s2923_s0, 4  ;;  %s15_s29 = int_to_ptr.vmem [resolvable:$true] %s14_s29 }
   0x2   :  { %2935 = sst [smem:[#allocation15_spill]] %s2927_s5  ;;  %s19_s10 = sshll.u32 %s2931_s1, 4  ;;  %s20_s10 = int_to_ptr.vmem [resolvable:$true] %s19_s10 }
   0x3   :  { %17 = dma.vmem_to_smem %s15_s29, 16, %s2215_s11, [#allocation6] }
   0x4   :  { %22 = dma.vmem_to_smem %s20_s10, 16, %s2216_s12, [#allocation6] }
   0x5   :  { %2185 = dma.done.wait [#allocation6], 32 }
   0x6   :  { %2186 = vsyncadd [#allocation6], 4294967264 }
   0x7   :  { %25 = sfence }
   0x8   :  { %26 = vsyncpa [#allocation10], 0 }
   0x9   :  { %28 = vsyncpa [#allocation10 + $0x1], 0  ;;  %s2273_s13 = smov 0   ;;  %s2275_s14 = smov 0  }
   0xa   :  { %s2277_s0 = smov 0   ;;  %s2279_s15 = smov 0  }
   0xb   :  { %s2281_s1 = smov 0   ;;  %s2283_s16 = smov 0  }
   0xc LB: > { %s1826_s17 = sadd.s32 4294967295, %s2213_s16   ;;  %s1827_s18 = sadd.s32 4294967294, %s2213_s16   ;;  %s2213_s16 = sphi %s2283_s16, %s34_s16   ;;  %s2209_s1 = sphi %s2281_s1, %s2947_s1   ;;  %s2205_s15 = sphi %s2279_s15, %s2946_s15   ;;  %s2201_s0 = sphi %s2277_s0, %s2945_s0   ;;  %s2197_s14 = sphi %s2275_s14, %s2944_s14   ;;  %s2193_s13 = sphi %s2273_s13, %s2943_s13  }
   0xd   : > { %s53_s19 = sadd.s32 1, %s2209_s1  ;;  %s225_s20 = sadd.s32 1, %s2201_s0 }
   0xe   : > { %p55_p0 = scmp.ge.s32.totalorder %s53_s19, 2  ;;  %p235_p1 = scmp.ne.s32.totalorder %s2201_s0, %s2197_s14 }
   0xf   : > { %p236_p2 = scmp.eq.s32.totalorder %s1826_s17, 1  ;;  %p241_p3 = scmp.ne.s32.totalorder %s2197_s14, %s2193_s13 }
  0x10   : > { %s2949_s19 = smov (%p55_p0, %s53_s19), 0  ;;  %p242_p5 = scmp.eq.s32.totalorder %s1827_s18, 1 }
  0x11   : > { %2936 = sst [smem:[#allocation13_spill]] %s2949_s19  ;;  %p2313_p4 = por %p236_p2, %p235_p1 }
  0x12   : > { %s220_s22 = ssub.s32 %s2209_s1, %s2949_s19  ;;  %p1838_p6 = scmp.ge.s32.totalorder %s2213_s16, 1 }
  0x13   : > { %p223_p7 = scmp.eq.s32.totalorder %s220_s22, 0  ;;  %p2320_p8 = por %p242_p5, %p241_p3 }
  0x14   : > { %p321_p9 = scmp.lt.s32.totalorder %s2213_s16, 3 }
  0x15   : > { %s2326_s24 = scalar_select %p223_p7, %s2201_s0, %s225_s20  }
  0x16   : > { %p322_p10 = pnand %p1838_p6, %p321_p9 }
  0x17   : > { %p379_p11 = scmp.lt.s32.totalorder (!%p322_p10), %s2205_s15, 1  ;;  %s386_s25 = sld [smem:[#allocation8 + %s2205_s15]] (!%p322_p10) }
  0x18   : > { %325 = sbr.rel (%p322_p10) target bundleno = 1059 (0x423), region = 44  ;;  %s404_s26 = sld [smem:[#allocation8 + %s2205_s15]] (!%p322_p10) }
  0x19   : > { %s2932_s27 = sand.u32 (!%p322_p10), 1, %s2197_s14   ;;  %s2939_s2 = sld [smem:[#allocation14_spill]] (!%p322_p10) }
  0x1a   : > { %s2337_s29 = sshll.u32 (!%p322_p10), %s2932_s27, 3  ;;  %s2940_s5 = sld [smem:[#allocation15_spill]] (!%p322_p10) }
  0x1b   : > { %s485_s20 = sld [smem:[#allocation8 + %s2205_s15]] (!%p322_p10) }
  0x1d   : > { %s2333_s28 = scalar_select %p379_p11, %s2205_s15, 1  ;;  %vm431_vm0 = vcmask 162816   ;;  %vm481_vm1 = vcmask 7168   ;;  %v2217_v5 = vmov -1e+30   ;;  %v2218_v6 = vmov 0.0  }
  0x1e   : > { %s1841_s12 = sadd.s32 4294967295, %s386_s25  ;;  %s1844_s17 = sadd.s32 4294967295, %s404_s26  ;;  %482 = vst.msk [vmem:[#allocation3] sm:$0xff] %vm481_vm1, %v2217_v5  ;;  %vm476_vm2 = vcmask 64512  }
  0x1f   : > { %s1840_s30 = sshll.u32 %s2333_s28, 3  ;;  %p1842_p12 = scmp.gt.s32.totalorder %s1841_s12, 0  ;;  %483 = vst.msk [vmem:[#allocation4] sm:$0xff] %vm481_vm1, %v2218_v6 }
  0x20   : > { %s385_s11 = scalar_lea.vmem %s2939_s2, %s1840_s30  ;;  %v428_v1 = vld [vmem:[%s2940_s5 + $0x10] sm:$0xff]  ;;  %v429_v2 = vld [vmem:[%s2940_s5 + $0x18] sm:$0xff]  ;;  %p1845_p13 = scmp.gt.s32.totalorder %s1844_s17, 0  ;;  %v426_v3 = vld [vmem:[%s2940_s5] sm:$0xff]  ;;  %484 = vst [vmem:[#allocation5] sm:$0xff] %v2218_v6 }
  0x21   : > { %v430_v0 = vld [vmem:[%s385_s11] sm:$0xff]  ;;  %v427_v4 = vld [vmem:[%s2940_s5 + $0x8] sm:$0xff]  ;;  %s2951_s12 = smov (%p1842_p12, %s1841_s12), 0  ;;  %s1890_s11 = smul.u32 20, %s2333_s28 }
  0x22   : > { %1888 = vmatpush.xpose.msk.msra.mxu2 %vm431_vm0, %v430_v0  ;;  %1889 = vmatpush.xpose.msk.msra.mxu3 %vm431_vm0, %v430_v0  ;;  %s2953_s17 = smov (%p1845_p13, %s1844_s17), 0  ;;  %s390_s27 = smul.u32 20, %s2951_s12 }
  0x23   : > { %1847 = vmatpush.xpose.msk.msra.mxu0 %vm431_vm0, %v430_v0  ;;  %1887 = vmatpush.xpose.msk.msra.mxu1 %vm431_vm0, %v430_v0  ;;  %s408_s10 = smul.u32 20, %s2953_s17  ;;  %s378_s2 = scalar_lea.vmem [#allocation9], %s2337_s29 }
  0x24   : > { %p393_p0 = scmp.lt.s32.totalorder %s390_s27, 19  ;;  %p1853_p2 = scmp.le.s32.totalorder %s485_s20, 0 }
  0x25   : > { %1850 = vmatmul.msk.f32.vlgmr.msra.gmra.mxu2 %vm431_vm0, %v428_v1  ;;  %1851 = vmatmul.msk.f32.vlgmr.msra.gmra.mxu3 %vm431_vm0, %v429_v2  ;;  %p411_p1 = scmp.lt.s32.totalorder %s408_s10, 19  ;;  %s2849_s17 = sld [smem:[#allocation7 + %s2205_s15]] (!%p1853_p2) }
  0x26   : > { %1848 = vmatmul.msk.f32.vlgmr.msra.gmra.mxu0 %vm431_vm0, %v426_v3  ;;  %1849 = vmatmul.msk.f32.vlgmr.msra.gmra.mxu1 %vm431_vm0, %v427_v4  ;;  %s2955_s27 = smov (!%p393_p0, %s390_s27), 19 }
  0x27   : > { %s2957_s10 = smov (!%p411_p1, %s408_s10), 19  ;;  %s396_s18 = sadd.s32 %s1890_s11, %s2955_s27 }
  0x28   : > { %s1843_s22 = sshll.u32 %s396_s18, 3  ;;  %s414_s25 = sadd.s32 %s1890_s11, %s2957_s10 }
  0x29   : > { %s2368_s9 = scalar_lea.vmem %s2925_s3, %s1843_s22  ;;  %s1846_s12 = sshll.u32 %s414_s25, 3 }
  0x2a   : > { %s2373_s19 = scalar_lea.vmem %s2926_s4, %s1846_s12 }
  0xa3   : > { %v464_v7 = vpop.f32.mrf.mxu0  ;;  %v467_v8 = vpop.f32.mrf.mxu1 }
  0xa4   : > { %477 = vst.msk [vmem:[#allocation2] sm:$0xff] %vm476_vm2, %v464_v7 }
  0xa5   : > { %478 = vst.msk [vmem:[#allocation2 + $0x8] sm:$0xff] %vm476_vm2, %v467_v8 }
  0xa6   : > { %489 = sbr.rel (%p1853_p2) target bundleno = 925 (0x39d), region = 52 }
  0xa8   : > { %v470_v9 = vpop.f32.mrf.mxu2  ;;  %v473_v10 = vpop.f32.mrf.mxu3 }
  0xa9   : > { %479 = vst.msk [vmem:[#allocation2 + $0x10] sm:$0xff] %vm476_vm2, %v470_v9 }
  0xaa   : > { %480 = vst.msk [vmem:[#allocation2 + $0x18] sm:$0xff] %vm476_vm2, %v473_v10 }
  0xab   : > { %v509_v11 = vld [vmem:[%s2368_s9 + $0x78] sm:$0xff]  ;;  %vm514_vm3 = vcmask 130048   ;;  %v2382_v12 = vld [vmem:[%s2929_s7] sm:$0xff]  ;;  %v650_v13 = vlaneseq  ;;  %v2219_v14 = vmov 0   ;;  %v508_v17 = vld [vmem:[%s2368_s9 + $0x70] sm:$0xff]  ;;  %vm885_vm4 = vcmask 1040384  }
  0xac   : > { %1854 = vmatpush.xpose.msk.msra.mxu0 %vm514_vm3, %v509_v11  ;;  %1955 = vset.pattern.permute.xlu0 %v2219_v14  ;;  %v1245_v15 = vperm.slane %v2382_v12, 0  ;;  %v1221_v18 = vrot.slane %v2382_v12, 5  ;;  %v2395_v19 = vld [vmem:[#allocation2] sm:$0xff]  ;;  %v507_v20 = vld [vmem:[%s2368_s9 + $0x68] sm:$0xff]  ;;  %v513_v26 = vld [vmem:[%s2368_s9 + $0x98] sm:$0xff]  ;;  %v1218_v62 = vrot.slane %v2382_v12, 2 }
  0xad   : > { %v2388_v16 = vshrl.u32 %v650_v13, 7  ;;  %v677_v22 = vperm.slane %v2395_v19, 4  ;;  %v663_v23 = vperm.slane %v2395_v19, 2  ;;  %v506_v24 = vld [vmem:[%s2368_s9 + $0x60] sm:$0xff]  ;;  %v2405_v25 = vld [vmem:[%s2929_s7 + $0x8] sm:$0xff]  ;;  %v505_v27 = vld [vmem:[%s2368_s9 + $0x58] sm:$0xff]  ;;  %1874 = vmatpush.xpose.msk.msra.mxu1 %vm514_vm3, %v513_v26 }
  0xae   : > { %1278 = vperm.xlu0 %1955, %v1245_v15   ;;  %v1250_v21 = vperm.slane %v1221_v18, 0  ;;  %v1253_v28 = vperm.slane %v2405_v25, 0  ;;  %v684_v29 = vperm.slane %v2395_v19, 5  ;;  %v670_v30 = vperm.slane %v2395_v19, 3  ;;  %v504_v31 = vld [vmem:[%s2368_s9 + $0x50] sm:$0xff]  ;;  %v2420_v34 = vld [vmem:[#allocation2 + $0x8] sm:$0xff] }
  0xaf   : > { %1954 = vset.pattern.permute.xlu2 %v2388_v16  ;;  %1953 = vset.pattern.permute.xlu1 %v2388_v16  ;;  %v512_v32 = vld [vmem:[%s2368_s9 + $0x90] sm:$0xff]  ;;  %v1226_v33 = vrot.slane %v2405_v25, 3  ;;  %v511_v35 = vld [vmem:[%s2368_s9 + $0x88] sm:$0xff]  ;;  %v705_v38 = vperm.slane %v2420_v34, 0  ;;  %v698_v39 = vperm.slane %v2395_v19, 7  ;;  %v502_v40 = vld [vmem:[%s2368_s9 + $0x40] sm:$0xff] }
  0xb0   : > { %1855 = vmatpush.xpose.msk.msra.mxu0 %vm514_vm3, %v508_v17  ;;  %v503_v36 = vld [vmem:[%s2368_s9 + $0x48] sm:$0xff]  ;;  %v510_v41 = vld [vmem:[%s2368_s9 + $0x80] sm:$0xff]  ;;  %v2434_v42 = vld [vmem:[%s2929_s7 + $0x10] sm:$0xff]  ;;  %v726_v46 = vperm.slane %v2420_v34, 3  ;;  %v719_v47 = vperm.slane %v2420_v34, 2  ;;  %v747_v53 = vperm.slane %v2420_v34, 6 }
  0xb1   : > { %1875 = vmatpush.xpose.msk.msra.mxu1 %vm514_vm3, %v512_v32  ;;  %v1256_v37 = vperm.slane %v1226_v33, 0  ;;  %v501_v43 = vld [vmem:[%s2368_s9 + $0x38] sm:$0xff]  ;;  %v490_v44 = vld [vmem:[%s2928_s6] sm:$0xff]  ;;  %v1261_v45 = vperm.slane %v2434_v42, 0  ;;  %v500_v48 = vld [vmem:[%s2368_s9 + $0x30] sm:$0xff]  ;;  %v1235_v49 = vrot.slane %v2434_v42, 5 }
  0xb2   : > { %v491_v50 = vld [vmem:[%s2928_s6 + $0x8] sm:$0xff]  ;;  %v740_v54 = vperm.slane %v2420_v34, 5  ;;  %v498_v55 = vld [vmem:[%s2368_s9 + $0x20] sm:$0xff]  ;;  %v2459_v56 = vld [vmem:[#allocation2 + $0x10] sm:$0xff]  ;;  %v1217_v63 = vrot.slane %v2382_v12, 1  ;;  %v649_v1 = vperm.slane %v2395_v19, 0 }
  0xb3   : > { %v499_v51 = vld [vmem:[%s2368_s9 + $0x28] sm:$0xff]  ;;  %v1266_v52 = vperm.slane %v1235_v49, 0  ;;  %v492_v57 = vld [vmem:[%s2928_s6 + $0x10] sm:$0xff]  ;;  %v497_v58 = vld [vmem:[%s2368_s9 + $0x18] sm:$0xff]  ;;  %v768_v59 = vperm.slane %v2459_v56, 1  ;;  %v761_v60 = vperm.slane %v2459_v56, 0 }
  0xb4   : > { %1856 = vmatpush.xpose.msk.msra.mxu0 %vm514_vm3, %v507_v20  ;;  %v496_v61 = vld [vmem:[%s2368_s9 + $0x10] sm:$0xff]  ;;  %v495_v0 = vld [vmem:[%s2368_s9 + $0x8] sm:$0xff]  ;;  %v1247_v2 = vperm.slane %v1218_v62, 0  ;;  %v1246_v3 = vperm.slane %v1217_v63, 0  ;;  %v494_v4 = vld [vmem:[%s2368_s9] sm:$0xff]  ;;  %v1220_v5 = vrot.slane %v2382_v12, 4 }
  0xb5   : > { %1876 = vmatpush.xpose.msk.msra.mxu1 %vm514_vm3, %v511_v35  ;;  %v1219_v6 = vrot.slane %v2382_v12, 3  ;;  %v656_v7 = vperm.slane %v2395_v19, 1  ;;  %v1223_v10 = vrot.slane %v2382_v12, 7  ;;  %v1222_v11 = vrot.slane %v2382_v12, 6  ;;  %v493_v26 = vld [vmem:[%s2928_s6 + $0x18] sm:$0xff] }
  0xb6   : > { %1298 = vperm.xlu0 %1955, %v1250_v21   ;;  %v1249_v8 = vperm.slane %v1220_v5, 0  ;;  %v691_v15 = vperm.slane %v2395_v19, 6  ;;  %v1225_v20 = vrot.slane %v2405_v25, 2  ;;  %v1224_v21 = vrot.slane %v2405_v25, 1 }
  0xb7   : > { %682 = vperm.xlu2 %1954, %v677_v22   ;;  %668 = vperm.xlu1 %1953, %v663_v23   ;;  %v1248_v9 = vperm.slane %v1219_v6, 0  ;;  %v1252_v17 = vperm.slane %v1223_v10, 0  ;;  %v1251_v18 = vperm.slane %v1222_v11, 0  ;;  %v712_v22 = vperm.slane %v2420_v34, 1 }
  0xb8   : > { %1857 = vmatpush.xpose.msk.msra.mxu0 %vm514_vm3, %v506_v24  ;;  %v1255_v23 = vperm.slane %v1225_v20, 0  ;;  %v1254_v24 = vperm.slane %v1224_v21, 0  ;;  %v1228_v12 = vrot.slane %v2405_v25, 5  ;;  %v1227_v19 = vrot.slane %v2405_v25, 4 }
  0xb9   : > { %1877 = vmatpush.xpose.msk.msra.mxu1 %vm514_vm3, %v510_v41  ;;  %v1230_v33 = vrot.slane %v2405_v25, 7  ;;  %v775_v35 = vperm.slane %v2459_v56, 2  ;;  %vm890_vm5 = vcmask 1042434   ;;  %vm893_vm6 = vcmask 1043459  }
  0xba   : > { %vm887_vm7 = vcmask 1041409   ;;  %vm896_vm8 = vcmask 1044484   ;;  %vm899_vm9 = vcmask 1045509   ;;  %vm902_vm10 = vcmask 1046534  }
  0xbb   : > { %vm905_vm11 = vcmask 1046528   ;;  %vm1500_vm12 = vcmask 261120  }
  0xbc   : > { %1858 = vmatpush.xpose.msk.msra.mxu0 %vm514_vm3, %v505_v27  ;;  %1878 = vmatmul.msk.f32.vlgmr.msra.gmra.mxu1 %vm514_vm3, %v490_v44  ;;  %v733_v27 = vperm.slane %v2420_v34, 4 }
  0xbe   : > { %1310 = vperm.xlu0 %1955, %v1253_v28   ;;  %v1258_v28 = vperm.slane %v1228_v12, 0 }
  0xbf   : > { %689 = vperm.xlu2 %1954, %v684_v29   ;;  %675 = vperm.xlu1 %1953, %v670_v30   ;;  %v1257_v29 = vperm.slane %v1227_v19, 0  ;;  %v1229_v30 = vrot.slane %v2405_v25, 6  ;;  %v1231_v25 = vrot.slane %v2434_v42, 1 }
  0xc0   : > { %1859 = vmatpush.xpose.msk.msra.mxu0 %vm514_vm3, %v504_v31  ;;  %v754_v31 = vperm.slane %v2420_v34, 7  ;;  %v2509_v34 = vld [vmem:[#allocation2 + $0x18] sm:$0xff] }
  0xc1   : > { %v1259_v32 = vperm.slane %v1229_v30, 0  ;;  %v845_v41 = vperm.slane %v2509_v34, 4  ;;  %v831_v5 = vperm.slane %v2509_v34, 2  ;;  %v838_v11 = vperm.slane %v2509_v34, 3 }
  0xc2   : > { %v852_v19 = vperm.slane %v2509_v34, 5 }
  0xc4   : > { %1860 = vmatpush.xpose.msk.msra.mxu0 %vm514_vm3, %v503_v36  ;;  %1879 = vmatmul.msk.f32.gmra.mxu1 %vm514_vm3, %v491_v50  ;;  %v782_v36 = vperm.slane %v2459_v56, 3 }
  0xc6   : > { %1322 = vperm.xlu0 %1955, %v1256_v37   ;;  %v1260_v37 = vperm.slane %v1230_v33, 0 }
  0xc7   : > { %710 = vperm.xlu2 %1954, %v705_v38   ;;  %703 = vperm.xlu1 %1953, %v698_v39   ;;  %v810_v38 = vperm.slane %v2459_v56, 7  ;;  %v789_v39 = vperm.slane %v2459_v56, 4 }
  0xc8   : > { %1861 = vmatpush.xpose.msk.msra.mxu0 %vm514_vm3, %v502_v40 }
  0xcc   : > { %1862 = vmatpush.xpose.msk.msra.mxu0 %vm514_vm3, %v501_v43  ;;  %1880 = vmatmul.msk.f32.gmra.mxu1 %vm514_vm3, %v492_v57  ;;  %v796_v43 = vperm.slane %v2459_v56, 5 }
  0xce   : > { %1342 = vperm.xlu0 %1955, %v1261_v45  }
  0xcf   : > { %731 = vperm.xlu2 %1954, %v726_v46   ;;  %724 = vperm.xlu1 %1953, %v719_v47   ;;  %v1232_v46 = vrot.slane %v2434_v42, 2 }
  0xd0   : > { %1863 = vmatpush.xpose.msk.msra.mxu0 %vm514_vm3, %v500_v48  ;;  %v803_v48 = vperm.slane %v2459_v56, 6 }
  0xd1   : > { %v1263_v49 = vperm.slane %v1232_v46, 0 }
  0xd4   : > { %1864 = vmatpush.xpose.msk.msra.mxu0 %vm514_vm3, %v499_v51  ;;  %1881 = vmatmul.msk.f32.gmra.mxu1 %vm514_vm3, %v493_v26  ;;  %v1233_v51 = vrot.slane %v2434_v42, 3 }
  0xd6   : > { %1362 = vperm.xlu0 %1955, %v1266_v52  }
  0xd7   : > { %752 = vperm.xlu2 %1954, %v747_v53   ;;  %745 = vperm.xlu1 %1953, %v740_v54   ;;  %v1264_v54 = vperm.slane %v1233_v51, 0 }
  0xd8   : > { %1865 = vmatpush.xpose.msk.msra.mxu0 %vm514_vm3, %v498_v55  ;;  %v2535_v55 = vld [vmem:[%s2929_s7 + $0x18] sm:$0xff] }
  0xd9   : > { %v1239_v56 = vrot.slane %v2535_v55, 2 }
  0xdc   : > { %1866 = vmatpush.xpose.msk.msra.mxu0 %vm514_vm3, %v497_v58  ;;  %v1271_v58 = vperm.slane %v1239_v56, 0  ;;  %v859_v56 = vperm.slane %v2509_v34, 6 }
  0xde   : > { %1963 = vset.pattern.permute.xlu0 %v2388_v16 }
  0xdf   : > { %773 = vperm.xlu2 %1954, %v768_v59   ;;  %766 = vperm.xlu1 %1953, %v761_v60   ;;  %v817_v60 = vperm.slane %v2509_v34, 0 }
  0xe0   : > { %1867 = vmatpush.xpose.msk.msra.mxu0 %vm514_vm3, %v496_v61 }
  0xe4   : > { %1868 = vmatpush.xpose.msk.msra.mxu0 %vm514_vm3, %v495_v0 }
  0xe6   : > { %654 = vperm.xlu0 %1963, %v649_v1   ;;  %v824_v1 = vperm.slane %v2509_v34, 1 }
  0xe7   : > { %1957 = vset.pattern.permute.xlu2 %v2219_v14  ;;  %1956 = vset.pattern.permute.xlu1 %v2219_v14 }
  0xe8   : > { %1286 = vperm.xlu2 %1957, %v1247_v2   ;;  %1282 = vperm.xlu1 %1956, %v1246_v3  }
  0xe9   : > { %1869 = vmatpush.xpose.msk.msra.mxu0 %vm514_vm3, %v494_v4  ;;  %v1236_v4 = vrot.slane %v2434_v42, 6 }
  0xec   : > { %1870 = vmatmul.msk.f32.vlgmr.msra.gmra.mxu0 %vm514_vm3, %v490_v44  ;;  %v1262_v44 = vperm.slane %v1231_v25, 0 }
  0xee   : > { %661 = vperm.xlu0 %1963, %v656_v7   ;;  %v1267_v7 = vperm.slane %v1236_v4, 0 }
  0xf0   : > { %1294 = vperm.xlu2 %1957, %v1249_v8   ;;  %1290 = vperm.xlu1 %1956, %v1248_v9   ;;  %v1237_v9 = vrot.slane %v2434_v42, 7 }
  0xf4   : > { %1871 = vmatmul.msk.f32.gmra.mxu0 %vm514_vm3, %v491_v50 }
  0xf6   : > { %696 = vperm.xlu0 %1963, %v691_v15   ;;  %v1268_v15 = vperm.slane %v1237_v9, 0 }
  0xf8   : > { %1306 = vperm.xlu2 %1957, %v1252_v17   ;;  %1302 = vperm.xlu1 %1956, %v1251_v18  }
  0xfc   : > { %1872 = vmatmul.msk.f32.gmra.mxu0 %vm514_vm3, %v492_v57  ;;  %v1234_v57 = vrot.slane %v2434_v42, 4  ;;  %v1238_v42 = vrot.slane %v2535_v55, 1 }
  0xfe   : > { %717 = vperm.xlu0 %1963, %v712_v22   ;;  %v1265_v61 = vperm.slane %v1234_v57, 0  ;;  %v1269_v22 = vperm.slane %v2535_v55, 0 }
 0x100   : > { %1318 = vperm.xlu2 %1957, %v1255_v23   ;;  %1314 = vperm.xlu1 %1956, %v1254_v24  }
 0x104   : > { %1873 = vmatmul.msk.f32.gmra.mxu0 %vm514_vm3, %v493_v26  ;;  %v1270_v26 = vperm.slane %v1238_v42, 0 }
 0x106   : > { %738 = vperm.xlu0 %1963, %v733_v27  }
 0x108   : > { %1330 = vperm.xlu2 %1957, %v1258_v28   ;;  %1326 = vperm.xlu1 %1956, %v1257_v29   ;;  %v1243_v29 = vrot.slane %v2535_v55, 6 }
 0x10e   : > { %759 = vperm.xlu0 %1963, %v754_v31   ;;  %v1275_v31 = vperm.slane %v1243_v29, 0 }
 0x110   : > { %1958 = vset.pattern.permute.xlu2 %v2388_v16  ;;  %1334 = vperm.xlu1 %1956, %v1259_v32  }
 0x111   : > { %v2528_v52 = vpop.permute.xlu2 %682 }
 0x116   : > { %780 = vperm.xlu0 %1963, %v775_v35  }
 0x118   : > { %787 = vperm.xlu2 %1958, %v782_v36   ;;  %1338 = vperm.xlu1 %1956, %v1260_v37  }
 0x119   : > { %v2544_v62 = vpop.permute.xlu2 %689 }
 0x11e   : > { %815 = vperm.xlu0 %1963, %v810_v38  }
 0x120   : > { %794 = vperm.xlu2 %1958, %v789_v39   ;;  %1959 = vset.pattern.permute.xlu1 %v2388_v16  ;;  %v2512_v40 = vpop.permute.xlu0 %1278 }
 0x121   : > { %v2551_v2 = vpop.permute.xlu2 %710 }
 0x126   : > { %850 = vperm.xlu0 %1963, %v845_v41  }
 0x128   : > { %1960 = vset.pattern.permute.xlu2 %v2219_v14  ;;  %801 = vperm.xlu1 %1959, %v796_v43   ;;  %v2518_v45 = vpop.permute.xlu0 %1298 }
 0x129   : > { %1346 = vperm.xlu2 %1960, %v1262_v44   ;;  %v2521_v47 = vpop.permute.xlu1 %668  ;;  %v2561_v8 = vpop.permute.xlu2 %731 }
 0x12e   : > { %1968 = vset.pattern.permute.xlu0 %v2219_v14 }
 0x12f   : > { %1382 = vperm.xlu0 %1968, %v1271_v58  }
 0x130   : > { %808 = vperm.xlu1 %1959, %v803_v48   ;;  %v2525_v50 = vpop.permute.xlu0 %1310 }
 0x131   : > { %1350 = vperm.xlu2 %1960, %v1263_v49   ;;  %v2530_v53 = vpop.permute.xlu1 %675  ;;  %v2567_v18 = vpop.permute.xlu2 %752 }
 0x137   : > { %1398 = vperm.xlu0 %1968, %v1275_v31  }
 0x138   : > { %1961 = vset.pattern.permute.xlu1 %v2219_v14  ;;  %v2541_v59 = vpop.permute.xlu0 %1322 }
 0x139   : > { %1962 = vset.pattern.permute.xlu2 %v2388_v16  ;;  %1354 = vperm.xlu1 %1961, %v1264_v54   ;;  %v2546_v63 = vpop.permute.xlu1 %703  ;;  %v633_v21 = vpop.f32.mrf.mxu1 }
 0x13a   : > { %v2577_v24 = vpop.permute.xlu2 %773  ;;  %v881_v12 = vrot.slane %v633_v21, 7 }
 0x140   : > { %v2548_v0 = vpop.permute.xlu0 %1342 }
 0x141   : > { %822 = vperm.xlu2 %1962, %v817_v60   ;;  %1358 = vperm.xlu1 %1961, %v1265_v61   ;;  %v2553_v3 = vpop.permute.xlu1 %724  ;;  %v636_v28 = vpop.f32.mrf.mxu1 }
 0x142   : > { %v2586_v36 = vrot.slane %v636_v28, 7  ;;  %v2594_v21 = vpop.permute.xlu2 %1286 }
 0x148   : > { %v2558_v6 = vpop.permute.xlu0 %1362 }
 0x149   : > { %829 = vperm.xlu2 %1962, %v824_v1   ;;  %1964 = vset.pattern.permute.xlu1 %v2388_v16  ;;  %v2564_v10 = vpop.permute.xlu1 %745 }
 0x151   : > { %1965 = vset.pattern.permute.xlu2 %v2219_v14  ;;  %836 = vperm.xlu1 %1964, %v831_v5   ;;  %v2569_v20 = vpop.permute.xlu1 %766 }
 0x152   : > { %1366 = vperm.xlu2 %1965, %v1267_v7  }
 0x158   : > { %v655_v17 = vpop.permute.xlu0 %654 }
 0x159   : > { %843 = vperm.xlu1 %1964, %v838_v11  }
 0x15a   : > { %1370 = vperm.xlu2 %1965, %v1268_v15   ;;  %v2580_v27 = vpop.permute.xlu1 %1282 }
 0x160   : > { %v2573_v23 = vpop.permute.xlu0 %661 }
 0x161   : > { %1966 = vset.pattern.permute.xlu1 %v2219_v14 }
 0x162   : > { %1967 = vset.pattern.permute.xlu2 %v2388_v16  ;;  %1374 = vperm.xlu1 %1966, %v1269_v22   ;;  %v2596_v22 = vpop.permute.xlu1 %1290 }
 0x168   : > { %v697_v41 = vpop.permute.xlu0 %696 }
 0x169   : > { %v604_v30 = vpop.f32.mrf.mxu0 }
 0x16a   : > { %v886_v32 = vsel %vm885_vm4, %v604_v30, %v881_v12  ;;  %v891_v33 = vsel %vm890_vm5, %v604_v30, %v881_v12  ;;  %v894_v35 = vsel %vm893_vm6, %v604_v30, %v881_v12  ;;  %857 = vperm.xlu2 %1967, %v852_v19   ;;  %1378 = vperm.xlu1 %1966, %v1270_v26  }
 0x16b   : > { %v892_v37 = vrot.slane %v891_v33, 2  ;;  %v895_v38 = vrot.slane %v894_v35, 3  ;;  %v953_v39 = vperm.slane %v886_v32, 0  ;;  %v954_v25 = vperm.slane %v886_v32, 1 }
 0x16c   : > { %v888_v43 = vsel %vm887_vm7, %v604_v30, %v881_v12  ;;  %v897_v44 = vsel %vm896_vm8, %v604_v30, %v881_v12  ;;  %v900_v46 = vsel %vm899_vm9, %v604_v30, %v881_v12  ;;  %v903_v48 = vsel %vm902_vm10, %v604_v30, %v881_v12 }
 0x16d   : > { %v957_v49 = vperm.slane %v892_v37, 0  ;;  %v958_v51 = vperm.slane %v892_v37, 1  ;;  %v960_v54 = vperm.slane %v895_v38, 1  ;;  %v1082_v57 = vadd.f32 %v954_v25, %v655_v17 }
 0x16e   : > { %v889_v58 = vrot.slane %v888_v43, 1  ;;  %v898_v60 = vrot.slane %v897_v44, 4  ;;  %v901_v61 = vrot.slane %v900_v46, 5  ;;  %v1081_v1 = vadd.f32 %v953_v39, %v655_v17 }
 0x16f   : > { %v904_v4 = vrot.slane %v903_v48, 6  ;;  %v906_v5 = vsel %vm905_vm11, %v881_v12, %v604_v30  ;;  %v959_v7 = vperm.slane %v895_v38, 0  ;;  %1972 = vtanh.f32 %v1082_v57 }
 0x170   : > { %v907_v9 = vrot.slane %v906_v5, 7  ;;  %v955_v11 = vperm.slane %v889_v58, 0  ;;  %v956_v15 = vperm.slane %v889_v58, 1  ;;  %v961_v42 = vperm.slane %v898_v60, 0 }
 0x171   : > { %v962_v19 = vperm.slane %v898_v60, 1  ;;  %v963_v26 = vperm.slane %v901_v61, 0  ;;  %v964_v28 = vperm.slane %v901_v61, 1  ;;  %v965_v29 = vperm.slane %v904_v4, 0  ;;  %v2603_v37 = vpop.f32.mrf.mxu0 }
 0x172   : > { %v966_v31 = vperm.slane %v904_v4, 1  ;;  %v967_v17 = vperm.slane %v907_v9, 0  ;;  %v1085_v32 = vadd.f32 %v957_v49, %v2521_v47  ;;  %864 = vperm.xlu2 %1967, %v859_v56   ;;  %1969 = vset.pattern.permute.xlu1 %v2388_v16  ;;  %v968_v12 = vperm.slane %v907_v9, 1  ;;  %v2627_v9 = vpop.permute.xlu1 %1302 }
 0x173   : > { %v1083_v30 = vadd.f32 %v955_v11, %v2573_v23  ;;  %v1084_v33 = vadd.f32 %v956_v15, %v2573_v23  ;;  %v1086_v35 = vadd.f32 %v958_v51, %v2521_v47  ;;  %v1087_v38 = vadd.f32 %v959_v7, %v2530_v53  ;;  %v718_v47 = vpop.permute.xlu0 %717  ;;  %v1295_v7 = vpop.permute.xlu2 %1294 }
 0x174   : > { %v1088_v39 = vadd.f32 %v960_v54, %v2530_v53  ;;  %v1089_v25 = vadd.f32 %v961_v42, %v2528_v52  ;;  %v1090_v43 = vadd.f32 %v962_v19, %v2528_v52  ;;  %v1091_v44 = vadd.f32 %v963_v26, %v2544_v62 }
 0x175   : > { %v1092_v16 = vadd.f32 %v964_v28, %v2544_v62  ;;  %v1093_v46 = vadd.f32 %v965_v29, %v697_v41  ;;  %v1094_v48 = vadd.f32 %v966_v31, %v697_v41  ;;  %v1973_v49 = vpop.eup %1972  ;;  %v2612_v23 = vadd.f32 %v967_v17, %v2546_v63 }
 0x176   : > { %1974 = vtanh.f32 %v1081_v1  ;;  %v908_v53 = vsel %vm885_vm4, %v2603_v37, %v2586_v36  ;;  %v909_v52 = vsel %vm887_vm7, %v2603_v37, %v2586_v36  ;;  %v1406_v51 = vmul.f32 %v1973_v49, %v2512_v40 }
 0x177   : > { %1976 = vtanh.f32 %v1083_v30  ;;  %v910_v62 = vrot.slane %v909_v52, 1  ;;  %v911_v41 = vsel %vm890_vm5, %v2603_v37, %v2586_v36  ;;  %v969_v56 = vperm.slane %v908_v53, 0 }
 0x178   : > { %1978 = vtanh.f32 %v1084_v33  ;;  %v912_v54 = vrot.slane %v911_v41, 2  ;;  %v970_v57 = vperm.slane %v908_v53, 1  ;;  %v1096_v58 = vadd.f32 %v968_v12, %v2546_v63 }
 0x179   : > { %1980 = vtanh.f32 %v1085_v32  ;;  %v971_v60 = vperm.slane %v910_v62, 0  ;;  %v972_v61 = vperm.slane %v910_v62, 1  ;;  %v1501_v1 = vsel %vm1500_vm12, %v1406_v51, 0.0 }
 0x17a   : > { %1982 = vtanh.f32 %v1086_v35  ;;  %v973_v4 = vperm.slane %v912_v54, 0  ;;  %v974_v5 = vperm.slane %v912_v54, 1  ;;  %1970 = vset.pattern.permute.xlu2 %v2219_v14  ;;  %v1097_v11 = vadd.f32 %v969_v56, %v2551_v2 }
 0x17b   : > { %1984 = vtanh.f32 %v1087_v38  ;;  %v1098_v15 = vadd.f32 %v970_v57, %v2551_v2  ;;  %v2631_v42 = vadd.f32 %v971_v60, %v718_v47  ;;  %v2633_v19 = vadd.f32 %v972_v61, %v718_v47 }
 0x17c   : > { %v1975_v63 = vpop.eup %1974  ;;  %1986 = vtanh.f32 %v1088_v39  ;;  %v2636_v26 = vadd.f32 %v973_v4, %v2553_v3  ;;  %v2639_v28 = vadd.f32 %v974_v5, %v2553_v3  ;;  %v915_v2 = vsel %vm896_vm8, %v2603_v37, %v2586_v36  ;;  %v1307_v5 = vpop.permute.xlu2 %1306 }
 0x17d   : > { %v1977_v29 = vpop.eup %1976  ;;  %1988 = vtanh.f32 %v1089_v25  ;;  %v1405_v31 = vmul.f32 %v1975_v63, %v2512_v40  ;;  %v866_v17 = vperm.slane %v2509_v34, 7  ;;  %v916_v30 = vrot.slane %v915_v2, 4 }
 0x17e   : > { %v1979_v32 = vpop.eup %1978  ;;  %1990 = vtanh.f32 %v1090_v43  ;;  %v1407_v12 = vmul.f32 %v1977_v29, %v2580_v27  ;;  %v913_v3 = vsel %vm893_vm6, %v2603_v37, %v2586_v36  ;;  %v1240_v38 = vrot.slane %v2535_v55, 3  ;;  %v739_v43 = vpop.permute.xlu0 %738 }
 0x17f   : > { %v1981_v33 = vpop.eup %1980  ;;  %1992 = vtanh.f32 %v1091_v44  ;;  %v1408_v35 = vmul.f32 %v1979_v32, %v2580_v27  ;;  %871 = vperm.xlu1 %1969, %v866_v17   ;;  %v914_v40 = vrot.slane %v913_v3, 3  ;;  %v977_v49 = vperm.slane %v916_v30, 0  ;;  %v1315_v29 = vpop.permute.xlu1 %1314 }
 0x180   : > { %v1983_v39 = vpop.eup %1982  ;;  %1994 = vtanh.f32 %v1092_v16  ;;  %v1409_v34 = vmul.f32 %v1981_v33, %v2594_v21  ;;  %v1469_v25 = vadd.f32 %v1407_v12, %v1405_v31  ;;  %v978_v44 = vperm.slane %v916_v30, 1 }
 0x181   : > { %v1985_v47 = vpop.eup %1984  ;;  %1996 = vtanh.f32 %v1093_v46  ;;  %v1410_v53 = vmul.f32 %v1983_v39, %v2594_v21  ;;  %v1502_v52 = vsel %vm1500_vm12, %v1408_v35, 0.0  ;;  %v1105_v57 = vadd.f32 %v977_v49, %v739_v43 }
 0x182   : > { %v1987_v51 = vpop.eup %1986  ;;  %1998 = vtanh.f32 %v1094_v48  ;;  %v1411_v27 = vmul.f32 %v1985_v47, %v2596_v22  ;;  %v1470_v62 = vadd.f32 %v1469_v25, %v1409_v34  ;;  %v1503_v41 = vadd.f32 %v1502_v52, %v1501_v1 }
 0x183   : > { %v1989_v54 = vpop.eup %1988  ;;  %2000 = vtanh.f32 %v2612_v23  ;;  %v1412_v16 = vmul.f32 %v1987_v51, %v2596_v22  ;;  %v1504_v56 = vsel %vm1500_vm12, %v1410_v53, 0.0  ;;  %v1106_v1 = vadd.f32 %v978_v44, %v739_v43 }
 0x184   : > { %v1991_v46 = vpop.eup %1990  ;;  %2002 = vtanh.f32 %v1096_v58  ;;  %v1413_v21 = vmul.f32 %v1989_v54, %v1295_v7  ;;  %v1471_v60 = vadd.f32 %v1470_v62, %v1411_v27  ;;  %v1505_v61 = vadd.f32 %v1504_v56, %v1503_v41  ;;  %v1319_v56 = vpop.permute.xlu2 %1318 }
 0x185   : > { %v1993_v4 = vpop.eup %1992  ;;  %v1414_v48 = vmul.f32 %v1991_v46, %v1295_v7  ;;  %v1506_v63 = vsel %vm1500_vm12, %v1412_v16, 0.0  ;;  %2004 = vtanh.f32 %v1097_v11  ;;  %v975_v12 = vperm.slane %v914_v40, 0 }
 0x186   : > { %v1995_v31 = vpop.eup %1994  ;;  %v1415_v23 = vmul.f32 %v1993_v4, %v2518_v45  ;;  %v1472_v22 = vadd.f32 %v1471_v60, %v1413_v21  ;;  %v1507_v2 = vadd.f32 %v1506_v63, %v1505_v61  ;;  %2006 = vtanh.f32 %v1098_v15 }
 0x187   : > { %v1997_v17 = vpop.eup %1996  ;;  %v1416_v58 = vmul.f32 %v1995_v31, %v2518_v45  ;;  %v1508_v32 = vsel %vm1500_vm12, %v1414_v48, 0.0  ;;  %2008 = vtanh.f32 %v2631_v42  ;;  %1971 = vset.pattern.permute.xlu1 %v2219_v14  ;;  %v976_v45 = vperm.slane %v914_v40, 1  ;;  %v1327_v21 = vpop.permute.xlu1 %1326 }
 0x188   : > { %v1999_v7 = vpop.eup %1998  ;;  %v1417_v11 = vmul.f32 %v1997_v17, %v2627_v9  ;;  %v1473_v30 = vadd.f32 %v1472_v22, %v1415_v23  ;;  %v1509_v3 = vadd.f32 %v1508_v32, %v1507_v2  ;;  %2010 = vtanh.f32 %v2633_v19 }
 0x189   : > { %v2001_v33 = vpop.eup %2000  ;;  %v1418_v15 = vmul.f32 %v1999_v7, %v2627_v9  ;;  %v1510_v35 = vsel %vm1500_vm12, %v1416_v58, 0.0  ;;  %2012 = vtanh.f32 %v2636_v26  ;;  %v1103_v19 = vadd.f32 %v975_v12, %v2561_v8  ;;  %v639_v58 = vpop.f32.mrf.mxu1 }
 0x18a   : > { %v2003_v39 = vpop.eup %2002  ;;  %v1419_v42 = vmul.f32 %v2001_v33, %v1307_v5  ;;  %v1474_v34 = vadd.f32 %v1473_v30, %v1417_v11  ;;  %v1511_v25 = vadd.f32 %v1510_v35, %v1509_v3  ;;  %2014 = vtanh.f32 %v2639_v28  ;;  %v760_v12 = vpop.permute.xlu0 %759 }
 0x18b   : > { %v2005_v14 = vpop.eup %2004  ;;  %v1420_v43 = vmul.f32 %v2003_v39, %v1307_v5  ;;  %v1512_v49 = vsel %vm1500_vm12, %v1418_v15, 0.0  ;;  %2016 = vtanh.f32 %v1105_v57  ;;  %v1104_v28 = vadd.f32 %v976_v45, %v2561_v8 }
 0x18c   : > { %v2007_v47 = vpop.eup %2006  ;;  %v1475_v9 = vadd.f32 %v1474_v34, %v1419_v42  ;;  %v1513_v53 = vadd.f32 %v1512_v49, %v1511_v25  ;;  %v1421_v52 = vmul.f32 %v2005_v14, %v2525_v50  ;;  %2018 = vtanh.f32 %v1106_v1 }
 0x18d   : > { %v2009_v26 = vpop.eup %2008  ;;  %v1514_v40 = vsel %vm1500_vm12, %v1420_v43, 0.0  ;;  %v1422_v44 = vmul.f32 %v2007_v47, %v2525_v50  ;;  %2020 = vtanh.f32 %v1103_v19  ;;  %v1272_v54 = vperm.slane %v1240_v38, 0 }
 0x18e   : > { %v2011_v51 = vpop.eup %2010  ;;  %v1515_v27 = vadd.f32 %v1514_v40, %v1513_v53  ;;  %v1423_v62 = vmul.f32 %v2009_v26, %v1315_v29  ;;  %v1476_v41 = vadd.f32 %v1475_v9, %v1421_v52  ;;  %2022 = vtanh.f32 %v1104_v28  ;;  %v2696_v9 = vpop.f32.mrf.mxu0 }
 0x18f   : > { %v2013_v16 = vpop.eup %2012  ;;  %v1424_v57 = vmul.f32 %v2011_v51, %v1315_v29  ;;  %v1516_v46 = vsel %vm1500_vm12, %v1422_v44, 0.0  ;;  %1386 = vperm.xlu2 %1970, %v1272_v54   ;;  %v921_v38 = vsel %vm905_vm11, %v2586_v36, %v2603_v37  ;;  %v917_v63 = vsel %vm899_vm9, %v2603_v37, %v2586_v36  ;;  %v1335_v52 = vpop.permute.xlu1 %1334 }
 0x190   : > { %v2015_v60 = vpop.eup %2014  ;;  %v1425_v61 = vmul.f32 %v2013_v16, %v1319_v56  ;;  %v1477_v50 = vadd.f32 %v1476_v41, %v1423_v62  ;;  %v1517_v4 = vadd.f32 %v1516_v46, %v1515_v27  ;;  %v922_v2 = vrot.slane %v921_v38, 7 }
 0x191   : > { %v2017_v8 = vpop.eup %2016  ;;  %v1426_v5 = vmul.f32 %v2015_v60, %v1319_v56  ;;  %v1518_v48 = vsel %vm1500_vm12, %v1424_v57, 0.0  ;;  %v918_v7 = vrot.slane %v917_v63, 5  ;;  %v919_v39 = vsel %vm902_vm10, %v2603_v37, %v2586_v36  ;;  %v1331_v56 = vpop.permute.xlu2 %1330 }
 0x192   : > { %v2019_v29 = vpop.eup %2018  ;;  %v1478_v1 = vadd.f32 %v1477_v50, %v1425_v61  ;;  %v1519_v31 = vadd.f32 %v1518_v48, %v1517_v4  ;;  %v983_v3 = vperm.slane %v922_v2, 0  ;;  %v984_v33 = vperm.slane %v922_v2, 1 }
 0x193   : > { %v2021_v23 = vpop.eup %2020  ;;  %v1520_v22 = vsel %vm1500_vm12, %v1426_v5, 0.0  ;;  %v1430_v30 = vmul.f32 %v2019_v29, %v1327_v21  ;;  %v1429_v35 = vmul.f32 %v2017_v8, %v1327_v21  ;;  %v2693_v42 = vrot.slane %v639_v58, 7 }
 0x194   : > { %v1521_v17 = vadd.f32 %v1520_v22, %v1519_v31  ;;  %v1427_v32 = vmul.f32 %v2021_v23, %v2541_v59  ;;  %v2023_v11 = vpop.eup %2022  ;;  %v1111_v34 = vadd.f32 %v983_v3, %v760_v12  ;;  %v1112_v25 = vadd.f32 %v984_v33, %v760_v12 }
 0x195   : > { %v1428_v15 = vmul.f32 %v2023_v11, %v2541_v59  ;;  %v920_v14 = vrot.slane %v919_v39, 6  ;;  %v979_v19 = vperm.slane %v918_v7, 0  ;;  %v980_v47 = vperm.slane %v918_v7, 1 }
 0x196   : > { %v1479_v45 = vadd.f32 %v1478_v1, %v1427_v32  ;;  %v1524_v59 = vsel %vm1500_vm12, %v1430_v30, 0.0  ;;  %2024 = vtanh.f32 %v1111_v34  ;;  %v1241_v44 = vrot.slane %v2535_v55, 4 }
 0x197   : > { %v1522_v49 = vsel %vm1500_vm12, %v1428_v15, 0.0  ;;  %v981_v26 = vperm.slane %v920_v14, 0  ;;  %v982_v40 = vperm.slane %v920_v14, 1  ;;  %v1107_v36 = vadd.f32 %v979_v19, %v2564_v10  ;;  %v1339_v48 = vpop.permute.xlu1 %1338 }
 0x198   : > { %v1480_v43 = vadd.f32 %v1479_v45, %v1429_v35  ;;  %v1523_v53 = vadd.f32 %v1522_v49, %v1521_v17  ;;  %v1108_v37 = vadd.f32 %v980_v47, %v2564_v10  ;;  %2026 = vtanh.f32 %v1112_v25 }
 0x199   : > { %v1109_v51 = vadd.f32 %v981_v26, %v2567_v18  ;;  %v1110_v27 = vadd.f32 %v982_v40, %v2567_v18  ;;  %2028 = vtanh.f32 %v1107_v36  ;;  %v1273_v62 = vperm.slane %v1241_v44, 0  ;;  %v2711_v31 = vpop.permute.xlu2 %787 }
 0x19a   : > { %v1525_v28 = vadd.f32 %v1524_v59, %v1523_v53  ;;  %v923_v41 = vsel %vm885_vm4, %v2696_v9, %v2693_v42  ;;  %2030 = vtanh.f32 %v1108_v37  ;;  %v1244_v10 = vrot.slane %v2535_v55, 7 }
 0x19b   : > { %v985_v54 = vperm.slane %v923_v41, 0  ;;  %v986_v16 = vperm.slane %v923_v41, 1  ;;  %2032 = vtanh.f32 %v1109_v51  ;;  %1390 = vperm.xlu1 %1971, %v1273_v62   ;;  %v1242_v57 = vrot.slane %v2535_v55, 5  ;;  %v781_v41 = vpop.permute.xlu0 %780 }
 0x19c   : > { %2034 = vtanh.f32 %v1110_v27  ;;  %v2025_v18 = vpop.eup %2024  ;;  %v1276_v4 = vperm.slane %v1244_v10, 0  ;;  %v926_v59 = vsel %vm890_vm5, %v2696_v9, %v2693_v42  ;;  %v930_v37 = vsel %vm896_vm8, %v2696_v9, %v2693_v42 }
 0x19d   : > { %v1113_v46 = vadd.f32 %v985_v54, %v2569_v20  ;;  %v1114_v21 = vadd.f32 %v986_v16, %v2569_v20  ;;  %v1274_v60 = vperm.slane %v1242_v57, 0  ;;  %v1435_v32 = vmul.f32 %v2025_v18, %v1339_v48 }
 0x19e   : > { %v2027_v61 = vpop.eup %2026  ;;  %v927_v36 = vrot.slane %v926_v59, 2  ;;  %v931_v27 = vrot.slane %v930_v37, 4  ;;  %v932_v16 = vsel %vm899_vm9, %v2696_v9, %v2693_v42 }
 0x19f   : > { %2036 = vtanh.f32 %v1113_v46  ;;  %v2029_v50 = vpop.eup %2028  ;;  %1394 = vperm.xlu2 %1970, %v1274_v60   ;;  %v1436_v22 = vmul.f32 %v2027_v61, %v1339_v48  ;;  %v933_v61 = vrot.slane %v932_v16, 5 }
 0x1a0   : > { %v2031_v8 = vpop.eup %2030  ;;  %v1431_v5 = vmul.f32 %v2029_v50, %v1331_v56  ;;  %2038 = vtanh.f32 %v1114_v21  ;;  %v989_v62 = vperm.slane %v927_v36, 0  ;;  %v990_v54 = vperm.slane %v927_v36, 1 }
 0x1a1   : > { %v2033_v38 = vpop.eup %2032  ;;  %v1432_v63 = vmul.f32 %v2031_v8, %v1331_v56  ;;  %v1530_v33 = vsel %vm1500_vm12, %v1436_v22, 0.0  ;;  %v795_v25 = vpop.permute.xlu2 %794  ;;  %v993_v21 = vperm.slane %v931_v27, 0  ;;  %v934_v50 = vsel %vm902_vm10, %v2696_v9, %v2693_v42 }
 0x1a2   : > { %v2035_v29 = vpop.eup %2034  ;;  %v1433_v55 = vmul.f32 %v2033_v38, %v1335_v52  ;;  %v1481_v1 = vadd.f32 %v1480_v43, %v1431_v5  ;;  %v802_v43 = vpop.permute.xlu1 %801  ;;  %v1117_v60 = vadd.f32 %v989_v62, %v781_v41  ;;  %v994_v48 = vperm.slane %v931_v27, 1 }
 0x1a3   : > { %v1434_v23 = vmul.f32 %v2035_v29, %v1335_v52  ;;  %v1526_v20 = vsel %vm1500_vm12, %v1432_v63, 0.0  ;;  %1402 = vperm.xlu1 %1971, %v1276_v4   ;;  %v1118_v4 = vadd.f32 %v990_v54, %v781_v41  ;;  %v935_v38 = vrot.slane %v934_v50, 6  ;;  %v816_v27 = vpop.permute.xlu0 %815 }
 0x1a4   : > { %v1482_v17 = vadd.f32 %v1481_v1, %v1433_v55  ;;  %v1527_v58 = vadd.f32 %v1526_v20, %v1525_v28  ;;  %v928_v28 = vsel %vm893_vm6, %v2696_v9, %v2693_v42  ;;  %v1121_v63 = vadd.f32 %v993_v21, %v795_v25 }
 0x1a5   : > { %v2037_v2 = vpop.eup %2036  ;;  %v1528_v12 = vsel %vm1500_vm12, %v1434_v23, 0.0  ;;  %v929_v56 = vrot.slane %v928_v28, 3  ;;  %v996_v29 = vperm.slane %v933_v61, 1  ;;  %v936_v1 = vsel %vm905_vm11, %v2693_v42, %v2696_v9 }
 0x1a6   : > { %v1529_v7 = vadd.f32 %v1528_v12, %v1527_v58  ;;  %v1437_v11 = vmul.f32 %v2037_v2, %v2548_v0  ;;  %v1483_v30 = vadd.f32 %v1482_v17, %v1435_v32  ;;  %v2039_v3 = vpop.eup %2038  ;;  %v1122_v20 = vadd.f32 %v994_v48, %v795_v25  ;;  %v642_v2 = vpop.f32.mrf.mxu1 }
 0x1a7   : > { %v1438_v15 = vmul.f32 %v2039_v3, %v2548_v0  ;;  %v924_v0 = vsel %vm887_vm7, %v2696_v9, %v2693_v42  ;;  %v992_v8 = vperm.slane %v929_v56, 1  ;;  %v991_v5 = vperm.slane %v929_v56, 0 }
 0x1a8   : > { %v2718_v35 = vadd.f32 %v1483_v30, %v1437_v11  ;;  %v1531_v45 = vadd.f32 %v1530_v33, %v1529_v7  ;;  %v925_v26 = vrot.slane %v924_v0, 1  ;;  %v997_v22 = vperm.slane %v935_v38, 0 }
 0x1a9   : > { %v1532_v39 = vsel %vm1500_vm12, %v1438_v15, 0.0  ;;  %v2723_v14 = vpop.permute.xlu2 %1346  ;;  %v1120_v55 = vadd.f32 %v992_v8, %v2711_v31  ;;  %v1119_v23 = vadd.f32 %v991_v5, %v2711_v31  ;;  %v998_v32 = vperm.slane %v935_v38, 1 }
 0x1aa   : > { %v2721_v34 = vadd.f32 %v1532_v39, %v1531_v45  ;;  %v2727_v19 = vpop.permute.xlu1 %808  ;;  %v988_v44 = vperm.slane %v925_v26, 1  ;;  %v987_v51 = vperm.slane %v925_v26, 0  ;;  %v1124_v7 = vadd.f32 %v996_v29, %v802_v43  ;;  %v2774_v45 = vpop.f32.mrf.mxu0 }
 0x1ab   : > { %v937_v11 = vrot.slane %v936_v1, 7  ;;  %v2770_v15 = vrot.slane %v642_v2, 7  ;;  %v1125_v31 = vadd.f32 %v997_v22, %v2727_v19  ;;  %v1126_v25 = vadd.f32 %v998_v32, %v2727_v19 }
 0x1ac   : > { %v1116_v10 = vadd.f32 %v988_v44, %v2577_v24  ;;  %v1115_v57 = vadd.f32 %v987_v51, %v2577_v24  ;;  %v995_v24 = vperm.slane %v933_v61, 0 }
 0x1ad   : > { %v1000_v0 = vperm.slane %v937_v11, 1  ;;  %v999_v62 = vperm.slane %v937_v11, 0 }
 0x1ae   : > { %2040 = vtanh.f32 %v1116_v10  ;;  %v1123_v58 = vadd.f32 %v995_v24, %v802_v43  ;;  %v939_v43 = vsel %vm887_vm7, %v2774_v45, %v2770_v15  ;;  %v945_v24 = vsel %vm896_vm8, %v2774_v45, %v2770_v15 }
 0x1af   : > { %2042 = vtanh.f32 %v1115_v57  ;;  %v940_v28 = vrot.slane %v939_v43, 1  ;;  %v1128_v16 = vadd.f32 %v1000_v0, %v816_v27 }
 0x1b0   : > { %2044 = vtanh.f32 %v1117_v60 }
 0x1b1   : > { %v2725_v49 = vpop.permute.xlu2 %1350  ;;  %2046 = vtanh.f32 %v1118_v4 }
 0x1b2   : > { %v2731_v53 = vpop.permute.xlu1 %1354  ;;  %2048 = vtanh.f32 %v1121_v63  ;;  %v1127_v63 = vadd.f32 %v999_v62, %v816_v27 }
 0x1b3   : > { %2050 = vtanh.f32 %v1120_v55  ;;  %v1003_v55 = vperm.slane %v940_v28, 0 }
 0x1b4   : > { %v2041_v17 = vpop.eup %2040  ;;  %2052 = vtanh.f32 %v1119_v23 }
 0x1b5   : > { %v2043_v12 = vpop.eup %2042  ;;  %2054 = vtanh.f32 %v1122_v20  ;;  %v1440_v9 = vmul.f32 %v2041_v17, %v2723_v14  ;;  %v947_v17 = vsel %vm899_vm9, %v2774_v45, %v2770_v15 }
 0x1b6   : > { %v2045_v33 = vpop.eup %2044  ;;  %v1439_v39 = vmul.f32 %v2043_v12, %v2723_v14  ;;  %2056 = vtanh.f32 %v1123_v58  ;;  %v938_v14 = vsel %vm885_vm4, %v2774_v45, %v2770_v15 }
 0x1b7   : > { %v2047_v42 = vpop.eup %2046  ;;  %2058 = vtanh.f32 %v1124_v7  ;;  %v1441_v26 = vmul.f32 %v2045_v33, %v2725_v49  ;;  %v1534_v19 = vsel %vm1500_vm12, %v1440_v9, 0.0  ;;  %v1002_v57 = vperm.slane %v938_v14, 1 }
 0x1b8   : > { %v2049_v59 = vpop.eup %2048  ;;  %v1442_v36 = vmul.f32 %v2047_v42, %v2725_v49  ;;  %v1485_v37 = vadd.f32 %v2718_v35, %v1439_v39  ;;  %2060 = vtanh.f32 %v1125_v31  ;;  %v941_v49 = vsel %vm890_vm5, %v2774_v45, %v2770_v15 }
 0x1b9   : > { %v2729_v47 = vpop.permute.xlu2 %822  ;;  %v2051_v44 = vpop.eup %2050  ;;  %2062 = vtanh.f32 %v1126_v25  ;;  %v1535_v54 = vadd.f32 %v1534_v19, %v2721_v34  ;;  %v1001_v4 = vperm.slane %v938_v14, 0  ;;  %v942_v48 = vrot.slane %v941_v49, 2 }
 0x1ba   : > { %v2741_v40 = vpop.permute.xlu1 %1358  ;;  %v2053_v51 = vpop.eup %2052  ;;  %v1444_v41 = vmul.f32 %v2051_v44, %v2731_v53  ;;  %v1486_v60 = vadd.f32 %v1485_v37, %v1441_v26  ;;  %v1536_v61 = vsel %vm1500_vm12, %v1442_v36, 0.0  ;;  %v943_v34 = vsel %vm893_vm6, %v2774_v45, %v2770_v15 }
 0x1bb   : > { %v2055_v35 = vpop.eup %2054  ;;  %v1443_v56 = vmul.f32 %v2053_v51, %v2731_v53  ;;  %v1445_v5 = vmul.f32 %v2049_v59, %v2741_v40  ;;  %v1004_v53 = vperm.slane %v940_v28, 1  ;;  %v1537_v23 = vadd.f32 %v1536_v61, %v1535_v54  ;;  %v851_v44 = vpop.permute.xlu0 %850 }
 0x1bc   : > { %v2057_v21 = vpop.eup %2056  ;;  %v1446_v50 = vmul.f32 %v2055_v35, %v2741_v40  ;;  %v1538_v29 = vsel %vm1500_vm12, %v1444_v41, 0.0  ;;  %2064 = vtanh.f32 %v1128_v16  ;;  %v1130_v20 = vadd.f32 %v1002_v57, %v2729_v47 }
 0x1bd   : > { %v2059_v8 = vpop.eup %2058  ;;  %v1487_v40 = vadd.f32 %v1486_v60, %v1443_v56  ;;  %v944_v58 = vrot.slane %v943_v34, 3  ;;  %v1129_v32 = vadd.f32 %v1001_v4, %v2729_v47  ;;  %v1539_v12 = vadd.f32 %v1538_v29, %v1537_v23 }
 0x1be   : > { %v2061_v1 = vpop.eup %2060  ;;  %v1540_v2 = vsel %vm1500_vm12, %v1446_v50, 0.0  ;;  %v1006_v11 = vperm.slane %v942_v48, 1  ;;  %v1448_v42 = vmul.f32 %v2059_v8, %v2558_v6  ;;  %2066 = vtanh.f32 %v1127_v63 }
 0x1bf   : > { %v2063_v22 = vpop.eup %2062  ;;  %v1488_v7 = vadd.f32 %v1487_v40, %v1445_v5  ;;  %v1005_v9 = vperm.slane %v942_v48, 0  ;;  %v946_v39 = vrot.slane %v945_v24, 4  ;;  %v1447_v25 = vmul.f32 %v2057_v21, %v2558_v6 }
 0x1c0   : > { %v1541_v43 = vadd.f32 %v1540_v2, %v1539_v12  ;;  %2068 = vtanh.f32 %v1130_v20  ;;  %v948_v59 = vrot.slane %v947_v17, 5  ;;  %v1008_v47 = vperm.slane %v944_v58, 1 }
 0x1c1   : > { %v2739_v52 = vpop.permute.xlu2 %829  ;;  %2070 = vtanh.f32 %v1129_v32  ;;  %v1489_v36 = vadd.f32 %v1488_v7, %v1447_v25  ;;  %v1542_v6 = vsel %vm1500_vm12, %v1448_v42, 0.0  ;;  %v1007_v28 = vperm.slane %v944_v58, 0 }
 0x1c2   : > { %v1132_v33 = vadd.f32 %v1004_v53, %v2739_v52  ;;  %v1131_v31 = vadd.f32 %v1003_v55, %v2739_v52  ;;  %v2065_v26 = vpop.eup %2064  ;;  %v949_v52 = vsel %vm902_vm10, %v2774_v45, %v2770_v15  ;;  %v1543_v27 = vadd.f32 %v1542_v6, %v1541_v43 }
 0x1c3   : > { %v2756_v18 = vpop.permute.xlu1 %836  ;;  %v1009_v49 = vperm.slane %v946_v39, 0  ;;  %v1010_v35 = vperm.slane %v946_v39, 1  ;;  %v950_v16 = vrot.slane %v949_v52, 6  ;;  %v1012_v60 = vperm.slane %v948_v59, 1  ;;  %v1383_v20 = vpop.permute.xlu0 %1382 }
 0x1c4   : > { %v1134_v37 = vadd.f32 %v1006_v11, %v2756_v18  ;;  %2072 = vtanh.f32 %v1132_v33  ;;  %v1133_v19 = vadd.f32 %v1005_v9, %v2756_v18  ;;  %v2067_v41 = vpop.eup %2066  ;;  %v1011_v48 = vperm.slane %v948_v59, 0 }
 0x1c5   : > { %2074 = vtanh.f32 %v1131_v31  ;;  %v1137_v63 = vadd.f32 %v1009_v49, %v851_v44  ;;  %v1014_v24 = vperm.slane %v950_v16, 1  ;;  %v1138_v40 = vadd.f32 %v1010_v35, %v851_v44 }
 0x1c6   : > { %v2069_v56 = vpop.eup %2068  ;;  %2076 = vtanh.f32 %v1134_v37  ;;  %v1013_v58 = vperm.slane %v950_v16, 0 }
 0x1c7   : > { %v2071_v61 = vpop.eup %2070  ;;  %2078 = vtanh.f32 %v1133_v19 }
 0x1c9   : > { %v2754_v46 = vpop.permute.xlu2 %1366 }
 0x1ca   : > { %v1450_v0 = vmul.f32 %v2063_v22, %v2754_v46  ;;  %v1449_v51 = vmul.f32 %v2061_v1, %v2754_v46  ;;  %v2073_v4 = vpop.eup %2072 }
 0x1cb   : > { %v2768_v3 = vpop.permute.xlu1 %843  ;;  %v2075_v53 = vpop.eup %2074 }
 0x1cc   : > { %v1136_v54 = vadd.f32 %v1008_v47, %v2768_v3  ;;  %v1544_v57 = vsel %vm1500_vm12, %v1450_v0, 0.0  ;;  %v1490_v21 = vadd.f32 %v1489_v36, %v1449_v51  ;;  %v1135_v46 = vadd.f32 %v1007_v28, %v2768_v3  ;;  %v2077_v22 = vpop.eup %2076 }
 0x1cd   : > { %v1545_v5 = vadd.f32 %v1544_v57, %v1543_v27  ;;  %v951_v3 = vsel %vm905_vm11, %v2770_v15, %v2774_v45  ;;  %v2079_v11 = vpop.eup %2078  ;;  %v1458_v39 = vmul.f32 %v2077_v22, %v1383_v20 }
 0x1ce   : > { %2080 = vtanh.f32 %v1136_v54  ;;  %v952_v15 = vrot.slane %v951_v3, 7  ;;  %v1457_v25 = vmul.f32 %v2079_v11, %v1383_v20  ;;  %v1566_v54 = vand.u32 127, %v650_v13 }
 0x1cf   : > { %2082 = vtanh.f32 %v1135_v46  ;;  %v1552_v52 = vsel %vm1500_vm12, %v1458_v39, 0.0  ;;  %v1626_v39 = vld [vmem:[%s2373_s19 + $0x48] sm:$0xff] }
 0x1d0   : > { %2084 = vtanh.f32 %v1137_v63  ;;  %v1015_v59 = vperm.slane %v952_v15, 0  ;;  %v1016_v36 = vperm.slane %v952_v15, 1  ;;  %v1631_v15 = vld [vmem:[%s2373_s19 + $0x70] sm:$0xff] }
 0x1d1   : > { %v2766_v30 = vpop.permute.xlu2 %1370 }
 0x1d2   : > { %v1452_v18 = vmul.f32 %v2065_v26, %v2766_v30  ;;  %v1451_v8 = vmul.f32 %v2067_v41, %v2766_v30 }
 0x1d4   : > { %v2802_v38 = vpop.permute.xlu1 %1374  ;;  %v1491_v55 = vadd.f32 %v1490_v21, %v1451_v8  ;;  %v1546_v30 = vsel %vm1500_vm12, %v1452_v18, 0.0  ;;  %v2081_v31 = vpop.eup %2080 }
 0x1d5   : > { %v1454_v50 = vmul.f32 %v2069_v56, %v2802_v38  ;;  %v1453_v34 = vmul.f32 %v2071_v61, %v2802_v38  ;;  %v1547_v2 = vadd.f32 %v1546_v30, %v1545_v5  ;;  %v2083_v0 = vpop.eup %2082  ;;  %v1567_v5 = vadd.s32 128, %v1566_v54 }
 0x1d6   : > { %v2085_v37 = vpop.eup %2084 }
 0x1d7   : > { %v1548_v38 = vsel %vm1500_vm12, %v1454_v50, 0.0  ;;  %v1492_v32 = vadd.f32 %v1491_v55, %v1453_v34  ;;  %vm1576_vm13 = vcmp.lt.s32.totalorder %v1567_v5, 160 }
 0x1d8   : > { %v1549_v42 = vadd.f32 %v1548_v38, %v1547_v2  ;;  %v2220_v2 = vmov -1e+30  }
 0x1d9   : > { %v2794_v10 = vpop.permute.xlu2 %857 }
 0x1da   : > { %v1140_v1 = vadd.f32 %v1012_v60, %v2794_v10  ;;  %v1139_v17 = vadd.f32 %v1011_v48, %v2794_v10  ;;  %v1399_v60 = vpop.permute.xlu0 %1398 }
 0x1dc   : > { %v1379_v62 = vpop.permute.xlu1 %1378  ;;  %2086 = vtanh.f32 %v1140_v1  ;;  %v1572_v1 = vstv %s2849_s17 }
 0x1dd   : > { %v1456_v29 = vmul.f32 %v2073_v4, %v1379_v62  ;;  %v1455_v23 = vmul.f32 %v2075_v53, %v1379_v62  ;;  %2088 = vtanh.f32 %v1138_v40  ;;  %vm1574_vm14 = vcmp.lt.s32.totalorder %v1567_v5, %v1572_v1 }
 0x1de   : > { %2090 = vtanh.f32 %v1139_v17  ;;  %v1578_v17 = vsel %vm1576_vm13, -1000000.0, %v2220_v2  ;;  %vm1573_vm15 = vcmp.lt.s32.totalorder %v1566_v54, %v1572_v1 }
 0x1df   : > { %v1550_v33 = vsel %vm1500_vm12, %v1456_v29, 0.0  ;;  %v1493_v9 = vadd.f32 %v1492_v32, %v1455_v23 }
 0x1e0   : > { %v1551_v43 = vadd.f32 %v1550_v33, %v1549_v42  ;;  %v1632_v33 = vld [vmem:[%s2373_s19 + $0x78] sm:$0xff]  ;;  %v1629_v42 = vld [vmem:[%s2373_s19 + $0x60] sm:$0xff] }
 0x1e1   : > { %v2820_v14 = vpop.permute.xlu2 %864  ;;  %v1494_v26 = vadd.f32 %v1493_v9, %v1457_v25  ;;  %1640 = vmatpush.msra.mxu2 %v1632_v33  ;;  %v1628_v9 = vld [vmem:[%s2373_s19 + $0x58] sm:$0xff]  ;;  %v1625_v25 = vld [vmem:[%s2373_s19 + $0x40] sm:$0xff] }
 0x1e2   : > { %v1142_v45 = vadd.f32 %v1014_v24, %v2820_v14  ;;  %v1141_v10 = vadd.f32 %v1013_v58, %v2820_v14  ;;  %v2087_v6 = vpop.eup %2086  ;;  %v1553_v28 = vadd.f32 %v1552_v52, %v1551_v43  ;;  %v1581_v43 = vld [vmem:[#allocation3] sm:$0xff]  ;;  %v1622_v52 = vld [vmem:[%s2373_s19 + $0x28] sm:$0xff] }
 0x1e3   : > { %v2089_v62 = vpop.eup %2088  ;;  %1641 = vmatpush.msra.mxu2 %v1631_v15 }
 0x1e4   : > { %2092 = vtanh.f32 %v1142_v45  ;;  %v2091_v14 = vpop.eup %2090  ;;  %v1630_v45 = vld [vmem:[%s2373_s19 + $0x68] sm:$0xff] }
 0x1e5   : > { %2094 = vtanh.f32 %v1141_v10  ;;  %1642 = vmatpush.msra.mxu2 %v1630_v45  ;;  %v1624_v10 = vld [vmem:[%s2373_s19 + $0x38] sm:$0xff] }
 0x1e7   : > { %1643 = vmatpush.msra.mxu2 %v1629_v42 }
 0x1e9   : > { %v1387_v12 = vpop.permute.xlu2 %1386  ;;  %1644 = vmatpush.msra.mxu2 %v1628_v9 }
 0x1ea   : > { %v1460_v47 = vmul.f32 %v2081_v31, %v1387_v12  ;;  %v1459_v19 = vmul.f32 %v2083_v0, %v1387_v12  ;;  %v2093_v21 = vpop.eup %2092  ;;  %v1627_v31 = vld [vmem:[%s2373_s19 + $0x50] sm:$0xff] }
 0x1eb   : > { %v2095_v4 = vpop.eup %2094  ;;  %v1466_v48 = vmul.f32 %v2093_v21, %v1399_v60  ;;  %1645 = vmatpush.msra.mxu2 %v1627_v31  ;;  %v1623_v0 = vld [vmem:[%s2373_s19 + $0x30] sm:$0xff] }
 0x1ec   : > { %v1554_v41 = vsel %vm1500_vm12, %v1460_v47, 0.0  ;;  %v1495_v35 = vadd.f32 %v1494_v26, %v1459_v19  ;;  %v1465_v24 = vmul.f32 %v2095_v4, %v1399_v60  ;;  %v1635_v19 = vld [vmem:[%s2373_s19 + $0x90] sm:$0xff] }
 0x1ed   : > { %v1555_v61 = vadd.f32 %v1554_v41, %v1553_v28  ;;  %v1560_v23 = vsel %vm1500_vm12, %v1466_v48, 0.0  ;;  %1646 = vmatpush.msra.mxu2 %v1626_v39  ;;  %v1620_v28 = vld [vmem:[%s2373_s19 + $0x18] sm:$0xff]  ;;  %v1617_v41 = vld [vmem:[%s2373_s19] sm:$0xff] }
 0x1ef   : > { %1647 = vmatpush.msra.mxu2 %v1625_v25 }
 0x1f1   : > { %v872_v7 = vpop.permute.xlu1 %871  ;;  %1648 = vmatpush.msra.mxu2 %v1624_v10 }
 0x1f2   : > { %v1143_v44 = vadd.f32 %v1015_v59, %v872_v7  ;;  %v1144_v27 = vadd.f32 %v1016_v36, %v872_v7 }
 0x1f3   : > { %1649 = vmatpush.msra.mxu2 %v1623_v0 }
 0x1f4   : > { %2096 = vtanh.f32 %v1143_v44  ;;  %v1621_v44 = vld [vmem:[%s2373_s19 + $0x20] sm:$0xff] }
 0x1f5   : > { %2098 = vtanh.f32 %v1144_v27  ;;  %1650 = vmatpush.msra.mxu2 %v1622_v52  ;;  %v1619_v27 = vld [vmem:[%s2373_s19 + $0x10] sm:$0xff] }
 0x1f7   : > { %1651 = vmatpush.msra.mxu2 %v1621_v44 }
 0x1f9   : > { %v1395_v51 = vpop.permute.xlu2 %1394  ;;  %1652 = vmatpush.msra.mxu2 %v1620_v28 }
 0x1fa   : > { %v1464_v16 = vmul.f32 %v2087_v6, %v1395_v51  ;;  %v1463_v18 = vmul.f32 %v2091_v14, %v1395_v51  ;;  %v2097_v63 = vpop.eup %2096  ;;  %v1636_v6 = vld [vmem:[%s2373_s19 + $0x98] sm:$0xff]  ;;  %v1634_v51 = vld [vmem:[%s2373_s19 + $0x88] sm:$0xff] }
 0x1fb   : > { %v2099_v29 = vpop.eup %2098  ;;  %1672 = vmatpush.msra.mxu3 %v1636_v6  ;;  %v1618_v14 = vld [vmem:[%s2373_s19 + $0x8] sm:$0xff]  ;;  %1653 = vmatpush.msra.mxu2 %v1619_v27 }
 0x1fc   : > { %v1558_v13 = vsel %vm1500_vm12, %v1464_v16, 0.0 }
 0x1fd   : > { %1673 = vmatpush.msra.mxu3 %v1635_v19  ;;  %1654 = vmatpush.msra.mxu2 %v1618_v14 }
 0x1ff   : > { %1674 = vmatpush.msra.mxu3 %v1634_v51  ;;  %1655 = vmatpush.msra.mxu2 %v1617_v41 }
 0x20d   : > { %v1391_v49 = vpop.permute.xlu1 %1390 }
 0x20e   : > { %v1461_v56 = vmul.f32 %v2085_v37, %v1391_v49  ;;  %v1462_v57 = vmul.f32 %v2089_v62, %v1391_v49  ;;  %v1633_v62 = vld [vmem:[%s2373_s19 + $0x80] sm:$0xff] }
 0x20f   : > { %1675 = vmatpush.msra.mxu3 %v1633_v62 }
 0x210   : > { %v1496_v46 = vadd.f32 %v1495_v35, %v1461_v56  ;;  %v1556_v50 = vsel %vm1500_vm12, %v1462_v57, 0.0 }
 0x211   : > { %v1557_v8 = vadd.f32 %v1556_v50, %v1555_v61 }
 0x212   : > { %v1497_v34 = vadd.f32 %v1496_v46, %v1463_v18  ;;  %v1601_v18 = vld [vmem:[#allocation4] sm:$0xff] }
 0x213   : > { %v1559_v53 = vadd.f32 %v1558_v13, %v1557_v8  ;;  %v1610_v8 = vld [vmem:[#allocation5] sm:$0xff] }
 0x214   : > { %v1498_v30 = vadd.f32 %v1497_v34, %v1465_v24 }
 0x215   : > { %v1403_v55 = vpop.permute.xlu1 %1402  ;;  %v1561_v20 = vadd.f32 %v1560_v23, %v1559_v53 }
 0x216   : > { %v1467_v3 = vmul.f32 %v2097_v63, %v1403_v55  ;;  %v1468_v40 = vmul.f32 %v2099_v29, %v1403_v55 }
 0x218   : > { %v1499_v38 = vadd.f32 %v1498_v30, %v1467_v3  ;;  %v1562_v22 = vsel %vm1500_vm12, %v1468_v40, 0.0 }
 0x219   : > { %v1563_v58 = vadd.f32 %v1562_v22, %v1561_v20 }
 0x21a   : > { %v1579_v12 = vsel %vm1573_vm15, %v1499_v38, -1000000.0 }
 0x21b   : > { %v1580_v32 = vsel %vm1574_vm14, %v1563_v58, %v1578_v17 }
 0x21c   : > { %v1582_v7 = vsel %vm1500_vm12, %v1580_v32, -inf }
 0x21d   : > { %v1583_v11 = vmax.f32 %v1579_v12, %v1582_v7 }
 0x21f   : > { %1584 = vmax.xlane.f32.xlu2 %v1583_v11 }
 0x292   : > { %v1585_v59 = vpop.xlane.xlu2 %1584 }
 0x293   : > { %v1586_v47 = vmax.f32 %v1581_v43, %v1585_v59 }
 0x295   : > { %v1587_v26 = vsub.f32 %v1581_v43, %v1586_v47  ;;  %1682 = vst.msk [vmem:[#allocation3] sm:$0xff] %vm481_vm1, %v1586_v47  ;;  %1592 = vperm.xlu0 %1968, %v1586_v47  }
 0x297   : > { %v1588_v36 = vmul.f32 1.442695, %v1587_v26 }
 0x299   : > { %2100 = vpow2.f32 %v1588_v36 }
 0x29f   : > { %v2101_v37 = vpop.eup %2100 }
 0x2a0   : > { %1613 = vperm.xlu1 %1971, %v2101_v37   ;;  %v1602_v46 = vmul.f32 %v2101_v37, %v1601_v18 }
 0x307   : > { %v1593_v49 = vpop.permute.xlu0 %1592 }
 0x308   : > { %v1595_v35 = vsub.f32 %v1579_v12, %v1593_v49  ;;  %v1596_v54 = vsub.f32 %v1580_v32, %v1593_v49 }
 0x30a   : > { %v1597_v16 = vmul.f32 1.442695, %v1595_v35  ;;  %v1599_v56 = vmul.f32 1.442695, %v1596_v54 }
 0x30c   : > { %2102 = vpow2.f32 %v1597_v16 }
 0x30d   : > { %2104 = vpow2.f32 %v1599_v56 }
 0x312   : > { %v2103_v57 = vpop.eup %2102  ;;  %v1614_v5 = vpop.permute.xlu1 %1613 }
 0x313   : > { %v2105_v21 = vpop.eup %2104  ;;  %1656 = vmatmul.f32.vlgmr.msra.gmra.mxu2 %v2103_v57  ;;  %v1616_v34 = vmul.f32 %v1614_v5, %v1610_v8 }
 0x314   : > { %1882 = vmatmul.msk.f32.vlgmr.msra.gmra.mxu3 %vm1500_vm12, %v2105_v21  ;;  %v1603_v60 = vsel %vm1500_vm12, %v2105_v21, 0.0 }
 0x315   : > { %v1604_v61 = vadd.f32 %v2103_v57, %v1603_v60 }
 0x317   : > { %1605 = vadd.xlane.f32.xlu0 %v1604_v61 }
 0x38a   : > { %v1606_v50 = vpop.xlane.xlu0 %1605 }
 0x38b   : > { %v1607_v4 = vadd.f32 %v1606_v50, %v1602_v46 }
 0x38d   : > { %1609 = vst.msk [vmem:[#allocation4] sm:$0xff] %vm481_vm1, %v1607_v4 }
 0x396   : > { %v1657_v13 = vpop.f32.mrf.mxu2 }
 0x397   : > { %v1677_v48 = vpop.f32.mrf.mxu3 }
 0x398   : > { %v1678_v53 = vadd.f32 %v1677_v48, %v1657_v13 }
 0x39a   : > { %v1680_v63 = vadd.f32 %v1678_v53, %v1616_v34 }
 0x39c   : > { %1681 = vst [vmem:[#allocation5] sm:$0xff] %v1680_v63 }
 0x39d PF: > { %v1686_v24 = vld [vmem:[#allocation4] sm:$0xff]  ;;  %v2221_v29 = vmov 0   ;;  %s1884_s19 = sshll.u32 %s2205_s15, 3  ;;  %s1713_s18 = sshll.u32 %s378_s2, 4  ;;  %s1714_s18 = int_to_ptr.vmem [resolvable:$true] %s1713_s18 }
 0x39e   : > { %2106 = vset.pattern.permute.xlu0 %v2221_v29  ;;  %2107 = vrcp.f32 %v1686_v24  ;;  %s1711_s11 = scalar_lea.hbm %s2930_s8, %s1884_s19  ;;  %s2941_s22 = sand.u32 1, %s2197_s14  }
 0x39f   : > { %s1715_s20 = sshll.u32 %s1711_s11, 4  ;;  %s1700_s25 = scalar_lea.sflag [#allocation10], %s2941_s22  ;;  %s1716_s20 = int_to_ptr.hbm [resolvable:$true] %s1715_s20 }
 0x3a0   : > { %s2147_s26 = sshra.s32 %s1716_s20, 4  ;;  %s2153_s12 = scalar_lea.hbm %s2930_s8, 16  ;;  %s2148_s26 = int_to_ptr.hbm [resolvable:$true] %s2147_s26 }
 0x3a1   : > { %s2149_s30 = scalar_lea.hbm %s2148_s26, 8  ;;  %p2154_p7 = scmp.lt.s32.totalorder %s2148_s26, %s2930_s8 }
 0x3a2   : > { %p2150_p3 = scmp.ne.s32.totalorder %s2148_s26, %s2149_s30  ;;  %p2155_p9 = scmp.lt.s32.totalorder %s2153_s12, %s2149_s30 }
 0x3a3   : > { %v1691_v40 = vld [vmem:[#allocation5] sm:$0xff] }
 0x3a4   : > { %v2108_v55 = vpop.eup %2107  ;;  %p2151_p5 = pnand %p2150_p3, %p2313_p4  ;;  %p2156_p10 = por %p2155_p9, %p2154_p7 }
 0x3a5   : > { %v1688_v1 = vmul.f32 %v2108_v55, %v1686_v24 }
 0x3a6   : > { %p2152_p6 = pneg %p2151_p5 }
 0x3a7   : > { %v1689_v23 = vsub.f32 2.0, %v1688_v1 }
 0x3a8   : > { %p2157_p11 = pnand %p2156_p10, %p2152_p6 }
 0x3a9   : > { %v1690_v3 = vmul.f32 %v2108_v55, %v1689_v23 }
 0x3ab   : > { %1694 = vperm.xlu0 %2106, %v1690_v3  }
 0x41d   : > { %v1695_v30 = vpop.permute.xlu0 %1694 }
 0x41e   : > { %v1697_v20 = vmul.f32 %v1695_v30, %v1691_v40 }
 0x420   : > { %1698 = vst [vmem:[%s378_s2] sm:$0xff] %v1697_v20 }
 0x421   : > { %2160 = shalt.err (!%p2157_p11)
}
 0x422   : > { %1891 = dma.vmem_to_hbm [thread:$0]  (%p2313_p4), %s1714_s18, 128, %s1716_s20, %s1700_s25  }
 0x423 PF: > { %p1897_p12 = scmp.ge.s32.totalorder %s2213_s16, 2  ;;  %s1727_s29 = sand.u32 1, %s2193_s13  }
 0x424   : > { %s1728_s2 = scalar_lea.sflag [#allocation10], %s1727_s29 }
 0x425   : > { %p1894_p13 = pnand %p1897_p12, %p2320_p8 }
 0x427   : > { %p1895_p0 = pneg %p1894_p13 }
 0x429   : > { %2188 = dma.done.wait (%p1895_p0), %s1728_s2, 128  }
 0x42a   : > { %2190 = vsyncadd (%p1895_p0), %s1728_s2, 4294967168  ;;  %s34_s16 = sadd.s32 1, %s2213_s16   ;;  %s2942_s21 = sld [smem:[#allocation13_spill]] }
 0x42b   : > { %p31_p1 = scmp.ge.s32.totalorder %s34_s16, 4   ;;  %s2943_s13 = smov %s2197_s14 }
 0x42c   : > { %s2944_s14 = smov %s2201_s0  ;;  %s2945_s0 = smov %s2326_s24 }
 0x42d   : > { %s2946_s15 = smov %s2209_s1  ;;  %33 = sbr.rel (!%p31_p1) target bundleno = 12 (0xc), region = 97 }
 0x430   : > { %s2947_s1 = smov %s2942_s21 }
 0x432   :  { %1734 = vsyncpa [#allocation10], 1 }
 0x433   :  { %1736 = vsyncpa [#allocation10 + $0x1], 1 }

</bundles_post_ra>
